<compile_context>
chip_gen: v6e
topology: v6e:2x2x1
jax: 0.10.0
libtpu: 0.0.40
codegen_flags: <defaults>
</compile_context>

<pallas_src>
import functools
import math

import jax
import jax.numpy as jnp
from jax.experimental import pallas as pl
from jax.experimental.pallas import tpu as pltpu

D_MODEL = 32
NUM_HEADS = 4
NUM_LAYERS = 2
HEAD_DIM = D_MODEL // NUM_HEADS
FFN_DIM = 4 * D_MODEL
LN_EPS = 1e-5


def _layer_norm(t, w, b):
    mu = jnp.mean(t, axis=-1, keepdims=True)
    var = jnp.mean((t - mu) ** 2, axis=-1, keepdims=True)
    return (t - mu) * jax.lax.rsqrt(var + LN_EPS) * w + b


def encoder_kernel(x_ref, wqkv_ref, wo_ref, w1_ref, w2_ref, b1_ref, vecs_ref,
                   o_ref, *, batch):
    # x_ref: (S*B, D) rows in seq-major order (row = s*B + b).  Row order is
    # irrelevant for projections / LayerNorm / FFN; attention correctness comes
    # from the block-diagonal mask below.
    x = x_ref[...]                                  # (N, D), N = S*B
    n = x.shape[0]

    # Additive mask: queries may only attend to keys of the same sequence.
    # Computed once (hoisted before the unrolled layer loop); exp(-1e30) == 0.
    rb = jax.lax.broadcasted_iota(jnp.int32, (n, n), 0) % batch
    cb = jax.lax.broadcasted_iota(jnp.int32, (n, n), 1) % batch
    neg = jnp.where(rb == cb, 0.0, -1e30)           # (N, N) f32

    for l in range(NUM_LAYERS):      # static unroll; all layer weights VMEM-resident
        wqkv = wqkv_ref[l]                           # (3, D, D)
        vecs = vecs_ref[l]                           # (9, D)
        bq, bk, bv = vecs[0:1], vecs[1:2], vecs[2:3]
        bo = vecs[3:4]
        ln1w, ln1b = vecs[4:5], vecs[5:6]
        b2 = vecs[6:7]
        ln2w, ln2b = vecs[7:8], vecs[8:9]

        # --- multi-head self-attention (nn.MultiheadAttention, eval mode) ---
        # 1/sqrt(head_dim) is already folded into wqkv[0] / bq at pack time.
        q = jnp.dot(x, wqkv[0], preferred_element_type=jnp.float32) + bq
        k = jnp.dot(x, wqkv[1], preferred_element_type=jnp.float32) + bk
        v = jnp.dot(x, wqkv[2], preferred_element_type=jnp.float32) + bv

        qh = q.reshape(n, NUM_HEADS, HEAD_DIM)       # free split of the lane dim
        kh = k.reshape(n, NUM_HEADS, HEAD_DIM)
        vh = v.reshape(n, NUM_HEADS, HEAD_DIM)

        # Head-batched scores over all S*B rows in a single dot_general.
        s = jnp.einsum("qhd,khd->hqk", qh, kh,
                       preferred_element_type=jnp.float32) + neg   # (H, N, N)
        m = jnp.max(s, axis=-1, keepdims=True)
        e = jnp.exp(s - m)
        p = e / jnp.sum(e, axis=-1, keepdims=True)   # exact divide (bit parity)
        ctx = jnp.einsum("hqk,khd->hqd", p, vh,
                         preferred_element_type=jnp.float32)        # (H, N, Hd)

        # Output projection.  wo_ref[l] is pre-reshaped on host to (H, Hd, D).
        # Kept as head-batched matmul + cross-head add (verified Mosaic lowering)
        # rather than a single (h,d) contraction: the extra cost is 3 tiny VPU
        # adds and is negligible at this size.
        attn = jnp.einsum("hqd,hde->hqe", ctx, wo_ref[l],
                          preferred_element_type=jnp.float32).sum(axis=0) + bo

        # --- residual + LayerNorm 1 ---
        y = _layer_norm(attn + x, ln1w, ln1b)

        # --- FFN: Linear -> ReLU -> Linear ---
        h1 = jnp.dot(y, w1_ref[l], preferred_element_type=jnp.float32) + b1_ref[l]
        h1 = jnp.maximum(h1, 0.0)
        f = jnp.dot(h1, w2_ref[l], preferred_element_type=jnp.float32) + b2

        # --- residual + LayerNorm 2 ---
        x = _layer_norm(f + y, ln2w, ln2b)

    o_ref[...] = x


def pack_weights(layer_params):
    """Host-side one-time packing: stack per-layer params, pre-transpose all
    weight matrices, fold the softmax scale into Wq/bq, pre-reshape Wo to
    (H, Hd, D), and consolidate all D-length vectors into one (L, 9, D) slab."""
    scale = 1.0 / math.sqrt(HEAD_DIM)
    wqkv3, wo3, w1t, w2t, b1s, vecs = [], [], [], [], [], []
    for p in layer_params:
        wq = p["wqkv"][:D_MODEL].T * scale                      # (D, D)
        wk = p["wqkv"][D_MODEL:2 * D_MODEL].T                   # (D, D)
        wv = p["wqkv"][2 * D_MODEL:].T                          # (D, D)
        wqkv3.append(jnp.stack([wq, wk, wv], axis=0))           # (3, D, D)
        wo3.append(p["wo"].T.reshape(NUM_HEADS, HEAD_DIM, D_MODEL))  # (H, Hd, D)
        w1t.append(p["w1"].T)                                   # (D, FFN)
        w2t.append(p["w2"].T)                                   # (FFN, D)
        b1s.append(p["b1"].reshape(1, FFN_DIM))                 # (1, FFN)
        bq = p["bqkv"][:D_MODEL] * scale
        bk = p["bqkv"][D_MODEL:2 * D_MODEL]
        bv = p["bqkv"][2 * D_MODEL:]
        vecs.append(jnp.stack([bq, bk, bv, p["bo"], p["ln1w"], p["ln1b"],
                               p["b2"], p["ln2w"], p["ln2b"]], axis=0))  # (9, D)
    return [jnp.stack(wqkv3), jnp.stack(wo3), jnp.stack(w1t),
            jnp.stack(w2t), jnp.stack(b1s), jnp.stack(vecs)]


def transformer_encoder(x_sbd, weights):
    # x_sbd: (S, B, D) seq-first, as in PyTorch.  A free reshape gives the
    # (S*B, D) row slab consumed by the kernel; no transpose is needed because
    # all row-wise ops are order-agnostic and attention uses the in-kernel
    # block-diagonal mask.
    S, B, D = x_sbd.shape
    n = S * B
    x2 = x_sbd.reshape(n, D)

    kernel = functools.partial(encoder_kernel, batch=B)

    def full_spec(a):
        nd = a.ndim
        return pl.BlockSpec(a.shape, lambda i, _nd=nd: (0,) * _nd)

    flops = NUM_LAYERS * (8 * n * D * D + 4 * n * n * D + 4 * n * D * FFN_DIM)
    transcendentals = NUM_LAYERS * (NUM_HEADS * n * n + 2 * n)
    bytes_accessed = 4 * (2 * n * D + sum(int(w.size) for w in weights))

    out = pl.pallas_call(
        kernel,
        out_shape=jax.ShapeDtypeStruct((n, D), jnp.float32),
        grid=(1,),                       # whole batch in one step (no per-step overhead)
        in_specs=[full_spec(a) for a in (x2, *weights)],
        out_specs=pl.BlockSpec((n, D), lambda i: (0, 0)),
        compiler_params=pltpu.CompilerParams(
            dimension_semantics=("arbitrary",)),
        cost_estimate=pl.CostEstimate(flops=flops,
                                      transcendentals=transcendentals,
                                      bytes_accessed=bytes_accessed),
    )(x2, *weights)
    return out.reshape(S, B, D)


transformer_encoder_jit = jax.jit(transformer_encoder)


# ---------------- pure-JAX reference for verification ----------------
def reference_layer(x_bsd, p):
    B, S, D = x_bsd.shape
    qkv = x_bsd @ p["wqkv"].T + p["bqkv"]
    q, k, v = qkv[..., :D], qkv[..., D:2 * D], qkv[..., 2 * D:]

    def heads(t):
        return t.reshape(B, S, NUM_HEADS, HEAD_DIM).transpose(0, 2, 1, 3)
    qh, kh, vh = heads(q), heads(k), heads(v)
    s = jnp.einsum("bhqd,bhkd->bhqk", qh, kh) / math.sqrt(HEAD_DIM)
    pattn = jax.nn.softmax(s, axis=-1)
    o = jnp.einsum("bhqk,bhkd->bhqd", pattn, vh)
    o = o.transpose(0, 2, 1, 3).reshape(B, S, D)
    attn = o @ p["wo"].T + p["bo"]

    def ln(t, w, b):
        mu = jnp.mean(t, axis=-1, keepdims=True)
        var = jnp.mean((t - mu) ** 2, axis=-1, keepdims=True)
        return (t - mu) * jax.lax.rsqrt(var + LN_EPS) * w + b

    y = ln(attn + x_bsd, p["ln1w"], p["ln1b"])
    h1 = jax.nn.relu(y @ p["w1"].T + p["b1"])
    f = h1 @ p["w2"].T + p["b2"]
    return ln(f + y, p["ln2w"], p["ln2b"])


def reference_encoder(x_sbd, layer_params):
    x = jnp.transpose(x_sbd, (1, 0, 2))
    for p in layer_params:
        x = reference_layer(x, p)
    return jnp.transpose(x, (1, 0, 2))


def init_layer_params(key):
    """PyTorch-convention shapes (in_proj_weight (3D,D), in_proj_bias (3D,), ...)."""
    ks = jax.random.split(key, 8)
    scale = 0.05
    return {
        "wqkv": scale * jax.random.normal(ks[0], (3 * D_MODEL, D_MODEL), jnp.float32),
        "bqkv": scale * jax.random.normal(ks[1], (3 * D_MODEL,), jnp.float32),
        "wo":   scale * jax.random.normal(ks[2], (D_MODEL, D_MODEL), jnp.float32),
        "bo":   scale * jax.random.normal(ks[3], (D_MODEL,), jnp.float32),
        "ln1w": jnp.ones((D_MODEL,), jnp.float32),
        "ln1b": jnp.zeros((D_MODEL,), jnp.float32),
        "w1":   scale * jax.random.normal(ks[4], (FFN_DIM, D_MODEL), jnp.float32),
        "b1":   scale * jax.random.normal(ks[5], (FFN_DIM,), jnp.float32),
        "w2":   scale * jax.random.normal(ks[6], (D_MODEL, FFN_DIM), jnp.float32),
        "b2":   scale * jax.random.normal(ks[7], (D_MODEL,), jnp.float32),
        "ln2w": jnp.ones((D_MODEL,), jnp.float32),
        "ln2b": jnp.zeros((D_MODEL,), jnp.float32),
    }


if __name__ == "__main__":
    key = jax.random.PRNGKey(0)
    k_x, *k_layers = jax.random.split(key, NUM_LAYERS + 1)

    SEQ, BATCH = 8, 2
    x = jax.random.normal(k_x, (SEQ, BATCH, D_MODEL), jnp.float32)  # (S, B, D)
    params = [init_layer_params(k) for k in k_layers]
    weights = pack_weights(params)      # one-time host-side pack / transpose / fold

    out = transformer_encoder_jit(x, weights)
    out = jax.block_until_ready(out)

    ref = reference_encoder(x, params)
    assert out.shape == (SEQ, BATCH, D_MODEL)
    # Softmax now uses an exact divide; remaining differences come only from
    # matmul accumulation order / MXU pass precision, well inside 1e-3.
    assert jnp.allclose(out, ref, atol=1e-3, rtol=1e-3), "mismatch vs reference"

    print("KERNEL_OK")
</pallas_src>

<mosaic_0001>
module attributes {stable_mosaic.version = 11 : i64} {
  func.func @encoder_kernel(%arg0: i32, %arg1: memref<16x32xf32, #tpu.memory_space<vmem>>, %arg2: memref<2x3x32x32xf32, #tpu.memory_space<vmem>>, %arg3: memref<2x4x8x32xf32, #tpu.memory_space<vmem>>, %arg4: memref<2x32x128xf32, #tpu.memory_space<vmem>>, %arg5: memref<2x128x32xf32, #tpu.memory_space<vmem>>, %arg6: memref<2x1x128xf32, #tpu.memory_space<vmem>>, %arg7: memref<2x9x32xf32, #tpu.memory_space<vmem>>, %arg8: memref<16x32xf32, #tpu.memory_space<vmem>>) attributes {dimension_semantics = [#tpu.dimension_semantics<arbitrary>], iteration_bounds = array<i64: 1>, scalar_prefetch = 0 : i64, scratch_operands = 0 : i64, tpu.core_type = #tpu.core_type<tc>, window_params = [{pipeline_mode = #tpu.pipeline_mode<synchronous>, transform_indices = @transform_0, window_bounds = array<i64: 16, 32>}, {pipeline_mode = #tpu.pipeline_mode<synchronous>, transform_indices = @transform_1, window_bounds = array<i64: 2, 3, 32, 32>}, {pipeline_mode = #tpu.pipeline_mode<synchronous>, transform_indices = @transform_2, window_bounds = array<i64: 2, 4, 8, 32>}, {pipeline_mode = #tpu.pipeline_mode<synchronous>, transform_indices = @transform_3, window_bounds = array<i64: 2, 32, 128>}, {pipeline_mode = #tpu.pipeline_mode<synchronous>, transform_indices = @transform_4, window_bounds = array<i64: 2, 128, 32>}, {pipeline_mode = #tpu.pipeline_mode<synchronous>, transform_indices = @transform_5, window_bounds = array<i64: 2, 1, 128>}, {pipeline_mode = #tpu.pipeline_mode<synchronous>, transform_indices = @transform_6, window_bounds = array<i64: 2, 9, 32>}, {pipeline_mode = #tpu.pipeline_mode<synchronous>, transform_indices = @transform_7, window_bounds = array<i64: 16, 32>}]} {
    %c0 = arith.constant 0 : index
    %c0_0 = arith.constant 0 : index
    %0 = vector.load %arg1[%c0, %c0_0] : memref<16x32xf32, #tpu.memory_space<vmem>>, vector<16x32xf32>
    %1 = tpu.iota {dimensions = array<i32: 0>} : vector<16x16xi32>
    %c2_i32 = arith.constant 2 : i32
    %c0_i32 = arith.constant 0 : i32
    %2 = arith.cmpi eq, %c2_i32, %c0_i32 : i32
    %c1_i32 = arith.constant 1 : i32
    %3 = arith.select %2, %c1_i32, %c2_i32 : i32
    %4 = vector.broadcast %3 : i32 to vector<16x16xi32>
    %5 = arith.remsi %1, %4 : vector<16x16xi32>
    %c0_i32_1 = arith.constant 0 : i32
    %6 = vector.broadcast %c0_i32_1 : i32 to vector<16x16xi32>
    %7 = arith.cmpi ne, %5, %6 : vector<16x16xi32>
    %c0_i32_2 = arith.constant 0 : i32
    %8 = vector.broadcast %c0_i32_2 : i32 to vector<16x16xi32>
    %9 = arith.cmpi slt, %5, %8 : vector<16x16xi32>
    %c0_i32_3 = arith.constant 0 : i32
    %10 = arith.cmpi slt, %3, %c0_i32_3 : i32
    %11 = vector.broadcast %10 : i1 to vector<16x16xi1>
    %12 = vector.broadcast %11 : vector<16x16xi1> to vector<16x16xi1>
    %13 = arith.xori %9, %12 : vector<16x16xi1>
    %14 = arith.andi %13, %7 : vector<16x16xi1>
    %15 = vector.broadcast %3 : i32 to vector<16x16xi32>
    %16 = arith.addi %5, %15 : vector<16x16xi32>
    %17 = arith.select %14, %16, %5 : vector<16x16xi1>, vector<16x16xi32>
    %18 = tpu.iota {dimensions = array<i32: 1>} : vector<16x16xi32>
    %c2_i32_4 = arith.constant 2 : i32
    %c0_i32_5 = arith.constant 0 : i32
    %19 = arith.cmpi eq, %c2_i32_4, %c0_i32_5 : i32
    %c1_i32_6 = arith.constant 1 : i32
    %20 = arith.select %19, %c1_i32_6, %c2_i32_4 : i32
    %21 = vector.broadcast %20 : i32 to vector<16x16xi32>
    %22 = arith.remsi %18, %21 : vector<16x16xi32>
    %c0_i32_7 = arith.constant 0 : i32
    %23 = vector.broadcast %c0_i32_7 : i32 to vector<16x16xi32>
    %24 = arith.cmpi ne, %22, %23 : vector<16x16xi32>
    %c0_i32_8 = arith.constant 0 : i32
    %25 = vector.broadcast %c0_i32_8 : i32 to vector<16x16xi32>
    %26 = arith.cmpi slt, %22, %25 : vector<16x16xi32>
    %c0_i32_9 = arith.constant 0 : i32
    %27 = arith.cmpi slt, %20, %c0_i32_9 : i32
    %28 = vector.broadcast %27 : i1 to vector<16x16xi1>
    %29 = vector.broadcast %28 : vector<16x16xi1> to vector<16x16xi1>
    %30 = arith.xori %26, %29 : vector<16x16xi1>
    %31 = arith.andi %30, %24 : vector<16x16xi1>
    %32 = vector.broadcast %20 : i32 to vector<16x16xi32>
    %33 = arith.addi %22, %32 : vector<16x16xi32>
    %34 = arith.select %31, %33, %22 : vector<16x16xi1>, vector<16x16xi32>
    %35 = arith.cmpi eq, %17, %34 : vector<16x16xi32>
    %cst = arith.constant 0.000000e+00 : f32
    %cst_10 = arith.constant -1.000000e+30 : f32
    %36 = vector.broadcast %cst : f32 to vector<16x16xf32>
    %37 = vector.broadcast %cst_10 : f32 to vector<16x16xf32>
    %38 = arith.select %35, %36, %37 : vector<16x16xi1>, vector<16x16xf32>
    %c0_11 = arith.constant 0 : index
    %c0_12 = arith.constant 0 : index
    %c0_13 = arith.constant 0 : index
    %c0_14 = arith.constant 0 : index
    %39 = vector.load %arg2[%c0_11, %c0_12, %c0_13, %c0_14] : memref<2x3x32x32xf32, #tpu.memory_space<vmem>>, vector<1x3x32x32xf32>
    %40 = vector.shape_cast %39 : vector<1x3x32x32xf32> to vector<3x32x32xf32>
    %c0_15 = arith.constant 0 : index
    %c0_16 = arith.constant 0 : index
    %c0_17 = arith.constant 0 : index
    %41 = vector.load %arg7[%c0_15, %c0_16, %c0_17] : memref<2x9x32xf32, #tpu.memory_space<vmem>>, vector<1x9x32xf32>
    %42 = vector.shape_cast %41 : vector<1x9x32xf32> to vector<9x32xf32>
    %43 = vector.extract_strided_slice %42 {offsets = [0, 0], sizes = [1, 32], strides = [1, 1]} : vector<9x32xf32> to vector<1x32xf32>
    %44 = vector.extract_strided_slice %42 {offsets = [1, 0], sizes = [1, 32], strides = [1, 1]} : vector<9x32xf32> to vector<1x32xf32>
    %45 = vector.extract_strided_slice %42 {offsets = [2, 0], sizes = [1, 32], strides = [1, 1]} : vector<9x32xf32> to vector<1x32xf32>
    %46 = vector.extract_strided_slice %42 {offsets = [3, 0], sizes = [1, 32], strides = [1, 1]} : vector<9x32xf32> to vector<1x32xf32>
    %47 = vector.extract_strided_slice %42 {offsets = [4, 0], sizes = [1, 32], strides = [1, 1]} : vector<9x32xf32> to vector<1x32xf32>
    %48 = vector.extract_strided_slice %42 {offsets = [5, 0], sizes = [1, 32], strides = [1, 1]} : vector<9x32xf32> to vector<1x32xf32>
    %49 = vector.extract_strided_slice %42 {offsets = [6, 0], sizes = [1, 32], strides = [1, 1]} : vector<9x32xf32> to vector<1x32xf32>
    %50 = vector.extract_strided_slice %42 {offsets = [7, 0], sizes = [1, 32], strides = [1, 1]} : vector<9x32xf32> to vector<1x32xf32>
    %51 = vector.extract_strided_slice %42 {offsets = [8, 0], sizes = [1, 32], strides = [1, 1]} : vector<9x32xf32> to vector<1x32xf32>
    %52 = vector.extract_strided_slice %40 {offsets = [0, 0, 0], sizes = [1, 32, 32], strides = [1, 1, 1]} : vector<3x32x32xf32> to vector<1x32x32xf32>
    %53 = vector.shape_cast %52 : vector<1x32x32xf32> to vector<32x32xf32>
    %cst_18 = arith.constant dense<0.000000e+00> : vector<16x32xf32>
    %54 = tpu.matmul %0, %53, %cst_18 {dimension_numbers = #tpu.dot_dimension_numbers<[1], [0], [0], [1], [0, 0, 1, 1], [], []>} : vector<16x32xf32>, vector<32x32xf32>, vector<16x32xf32> -> vector<16x32xf32>
    %55 = vector.broadcast %43 : vector<1x32xf32> to vector<16x32xf32>
    %56 = arith.addf %54, %55 : vector<16x32xf32>
    %57 = vector.extract_strided_slice %40 {offsets = [1, 0, 0], sizes = [1, 32, 32], strides = [1, 1, 1]} : vector<3x32x32xf32> to vector<1x32x32xf32>
    %58 = vector.shape_cast %57 : vector<1x32x32xf32> to vector<32x32xf32>
    %cst_19 = arith.constant dense<0.000000e+00> : vector<16x32xf32>
    %59 = tpu.matmul %0, %58, %cst_19 {dimension_numbers = #tpu.dot_dimension_numbers<[1], [0], [0], [1], [0, 0, 1, 1], [], []>} : vector<16x32xf32>, vector<32x32xf32>, vector<16x32xf32> -> vector<16x32xf32>
    %60 = vector.broadcast %44 : vector<1x32xf32> to vector<16x32xf32>
    %61 = arith.addf %59, %60 : vector<16x32xf32>
    %62 = vector.extract_strided_slice %40 {offsets = [2, 0, 0], sizes = [1, 32, 32], strides = [1, 1, 1]} : vector<3x32x32xf32> to vector<1x32x32xf32>
    %63 = vector.shape_cast %62 : vector<1x32x32xf32> to vector<32x32xf32>
    %cst_20 = arith.constant dense<0.000000e+00> : vector<16x32xf32>
    %64 = tpu.matmul %0, %63, %cst_20 {dimension_numbers = #tpu.dot_dimension_numbers<[1], [0], [0], [1], [0, 0, 1, 1], [], []>} : vector<16x32xf32>, vector<32x32xf32>, vector<16x32xf32> -> vector<16x32xf32>
    %65 = vector.broadcast %45 : vector<1x32xf32> to vector<16x32xf32>
    %66 = arith.addf %64, %65 : vector<16x32xf32>
    %67 = vector.shape_cast %56 : vector<16x32xf32> to vector<16x4x8xf32>
    %68 = vector.shape_cast %61 : vector<16x32xf32> to vector<16x4x8xf32>
    %69 = vector.shape_cast %66 : vector<16x32xf32> to vector<16x4x8xf32>
    "tpu.trace_start"() <{level = 10 : i32, message = "qhd,khd->hqk"}> : () -> ()
    %cst_21 = arith.constant dense<0.000000e+00> : vector<4x16x16xf32>
    %70 = tpu.matmul %67, %68, %cst_21 {dimension_numbers = #tpu.dot_dimension_numbers<[2], [2], [0], [0], [0, 1, 0, 0, 1, 0], [1], [1]>} : vector<16x4x8xf32>, vector<16x4x8xf32>, vector<4x16x16xf32> -> vector<4x16x16xf32>
    "tpu.trace_stop"() : () -> ()
    %71 = vector.shape_cast %38 : vector<16x16xf32> to vector<1x16x16xf32>
    %72 = vector.broadcast %71 : vector<1x16x16xf32> to vector<4x16x16xf32>
    %73 = arith.addf %70, %72 : vector<4x16x16xf32>
    %cst_22 = arith.constant dense<0xFF800000> : vector<4x16xf32>
    %74 = vector.multi_reduction <maximumf>, %73, %cst_22 [2] : vector<4x16x16xf32> to vector<4x16xf32>
    %75 = vector.shape_cast %74 : vector<4x16xf32> to vector<4x16x1xf32>
    %76 = vector.broadcast %75 : vector<4x16x1xf32> to vector<4x16x16xf32>
    %77 = arith.subf %73, %76 : vector<4x16x16xf32>
    %78 = math.exp %77 : vector<4x16x16xf32>
    %cst_23 = arith.constant dense<0.000000e+00> : vector<4x16xf32>
    %79 = vector.multi_reduction <add>, %78, %cst_23 [2] : vector<4x16x16xf32> to vector<4x16xf32>
    %80 = vector.shape_cast %79 : vector<4x16xf32> to vector<4x16x1xf32>
    %81 = vector.broadcast %80 : vector<4x16x1xf32> to vector<4x16x16xf32>
    %82 = arith.divf %78, %81 : vector<4x16x16xf32>
    "tpu.trace_start"() <{level = 10 : i32, message = "hqk,khd->hqd"}> : () -> ()
    %cst_24 = arith.constant dense<0.000000e+00> : vector<4x16x8xf32>
    %83 = tpu.matmul %82, %69, %cst_24 {dimension_numbers = #tpu.dot_dimension_numbers<[2], [0], [1], [2], [0, 0, 0, 1, 1, 2], [0], [1]>} : vector<4x16x16xf32>, vector<16x4x8xf32>, vector<4x16x8xf32> -> vector<4x16x8xf32>
    "tpu.trace_stop"() : () -> ()
    %c0_25 = arith.constant 0 : index
    %c0_26 = arith.constant 0 : index
    %c0_27 = arith.constant 0 : index
    %c0_28 = arith.constant 0 : index
    %84 = vector.load %arg3[%c0_25, %c0_26, %c0_27, %c0_28] : memref<2x4x8x32xf32, #tpu.memory_space<vmem>>, vector<1x4x8x32xf32>
    %85 = vector.shape_cast %84 : vector<1x4x8x32xf32> to vector<4x8x32xf32>
    "tpu.trace_start"() <{level = 10 : i32, message = "hqd,hde->hqe"}> : () -> ()
    %cst_29 = arith.constant dense<0.000000e+00> : vector<4x16x32xf32>
    %86 = tpu.matmul %83, %85, %cst_29 {dimension_numbers = #tpu.dot_dimension_numbers<[2], [1], [1], [2], [0, 0, 0, 1, 1, 2], [0], [0]>} : vector<4x16x8xf32>, vector<4x8x32xf32>, vector<4x16x32xf32> -> vector<4x16x32xf32>
    "tpu.trace_stop"() : () -> ()
    %cst_30 = arith.constant dense<0.000000e+00> : vector<16x32xf32>
    %87 = vector.multi_reduction <add>, %86, %cst_30 [0] : vector<4x16x32xf32> to vector<16x32xf32>
    %88 = vector.broadcast %46 : vector<1x32xf32> to vector<16x32xf32>
    %89 = arith.addf %87, %88 : vector<16x32xf32>
    %90 = arith.addf %89, %0 : vector<16x32xf32>
    %cst_31 = arith.constant dense<0.000000e+00> : vector<16xf32>
    %91 = vector.multi_reduction <add>, %90, %cst_31 [1] : vector<16x32xf32> to vector<16xf32>
    %92 = vector.shape_cast %91 : vector<16xf32> to vector<16x1xf32>
    %cst_32 = arith.constant 3.200000e+01 : f32
    %93 = vector.broadcast %cst_32 : f32 to vector<16x1xf32>
    %94 = arith.divf %92, %93 : vector<16x1xf32>
    %95 = vector.broadcast %94 : vector<16x1xf32> to vector<16x32xf32>
    %96 = arith.subf %90, %95 : vector<16x32xf32>
    %97 = arith.mulf %96, %96 : vector<16x32xf32>
    %cst_33 = arith.constant dense<0.000000e+00> : vector<16xf32>
    %98 = vector.multi_reduction <add>, %97, %cst_33 [1] : vector<16x32xf32> to vector<16xf32>
    %99 = vector.shape_cast %98 : vector<16xf32> to vector<16x1xf32>
    %cst_34 = arith.constant 3.200000e+01 : f32
    %100 = vector.broadcast %cst_34 : f32 to vector<16x1xf32>
    %101 = arith.divf %99, %100 : vector<16x1xf32>
    %102 = vector.broadcast %94 : vector<16x1xf32> to vector<16x32xf32>
    %103 = arith.subf %90, %102 : vector<16x32xf32>
    %cst_35 = arith.constant 9.99999974E-6 : f32
    %104 = vector.broadcast %cst_35 : f32 to vector<16x1xf32>
    %105 = arith.addf %101, %104 : vector<16x1xf32>
    %106 = math.rsqrt %105 : vector<16x1xf32>
    %107 = vector.broadcast %106 : vector<16x1xf32> to vector<16x32xf32>
    %108 = arith.mulf %103, %107 : vector<16x32xf32>
    %109 = vector.broadcast %47 : vector<1x32xf32> to vector<16x32xf32>
    %110 = arith.mulf %108, %109 : vector<16x32xf32>
    %111 = vector.broadcast %48 : vector<1x32xf32> to vector<16x32xf32>
    %112 = arith.addf %110, %111 : vector<16x32xf32>
    %c0_36 = arith.constant 0 : index
    %c0_37 = arith.constant 0 : index
    %c0_38 = arith.constant 0 : index
    %113 = vector.load %arg4[%c0_36, %c0_37, %c0_38] : memref<2x32x128xf32, #tpu.memory_space<vmem>>, vector<1x32x128xf32>
    %114 = vector.shape_cast %113 : vector<1x32x128xf32> to vector<32x128xf32>
    %cst_39 = arith.constant dense<0.000000e+00> : vector<16x128xf32>
    %115 = tpu.matmul %112, %114, %cst_39 {dimension_numbers = #tpu.dot_dimension_numbers<[1], [0], [0], [1], [0, 0, 1, 1], [], []>} : vector<16x32xf32>, vector<32x128xf32>, vector<16x128xf32> -> vector<16x128xf32>
    %c0_40 = arith.constant 0 : index
    %c0_41 = arith.constant 0 : index
    %c0_42 = arith.constant 0 : index
    %116 = vector.load %arg6[%c0_40, %c0_41, %c0_42] : memref<2x1x128xf32, #tpu.memory_space<vmem>>, vector<1x1x128xf32>
    %117 = vector.shape_cast %116 : vector<1x1x128xf32> to vector<1x128xf32>
    %118 = vector.broadcast %117 : vector<1x128xf32> to vector<16x128xf32>
    %119 = arith.addf %115, %118 : vector<16x128xf32>
    %cst_43 = arith.constant 0.000000e+00 : f32
    %120 = vector.broadcast %cst_43 : f32 to vector<16x128xf32>
    %121 = arith.maximumf %119, %120 : vector<16x128xf32>
    %c0_44 = arith.constant 0 : index
    %c0_45 = arith.constant 0 : index
    %c0_46 = arith.constant 0 : index
    %122 = vector.load %arg5[%c0_44, %c0_45, %c0_46] : memref<2x128x32xf32, #tpu.memory_space<vmem>>, vector<1x128x32xf32>
    %123 = vector.shape_cast %122 : vector<1x128x32xf32> to vector<128x32xf32>
    %cst_47 = arith.constant dense<0.000000e+00> : vector<16x32xf32>
    %124 = tpu.matmul %121, %123, %cst_47 {dimension_numbers = #tpu.dot_dimension_numbers<[1], [0], [0], [1], [0, 0, 1, 1], [], []>} : vector<16x128xf32>, vector<128x32xf32>, vector<16x32xf32> -> vector<16x32xf32>
    %125 = vector.broadcast %49 : vector<1x32xf32> to vector<16x32xf32>
    %126 = arith.addf %124, %125 : vector<16x32xf32>
    %127 = arith.addf %126, %112 : vector<16x32xf32>
    %cst_48 = arith.constant dense<0.000000e+00> : vector<16xf32>
    %128 = vector.multi_reduction <add>, %127, %cst_48 [1] : vector<16x32xf32> to vector<16xf32>
    %129 = vector.shape_cast %128 : vector<16xf32> to vector<16x1xf32>
    %cst_49 = arith.constant 3.200000e+01 : f32
    %130 = vector.broadcast %cst_49 : f32 to vector<16x1xf32>
    %131 = arith.divf %129, %130 : vector<16x1xf32>
    %132 = vector.broadcast %131 : vector<16x1xf32> to vector<16x32xf32>
    %133 = arith.subf %127, %132 : vector<16x32xf32>
    %134 = arith.mulf %133, %133 : vector<16x32xf32>
    %cst_50 = arith.constant dense<0.000000e+00> : vector<16xf32>
    %135 = vector.multi_reduction <add>, %134, %cst_50 [1] : vector<16x32xf32> to vector<16xf32>
    %136 = vector.shape_cast %135 : vector<16xf32> to vector<16x1xf32>
    %cst_51 = arith.constant 3.200000e+01 : f32
    %137 = vector.broadcast %cst_51 : f32 to vector<16x1xf32>
    %138 = arith.divf %136, %137 : vector<16x1xf32>
    %139 = vector.broadcast %131 : vector<16x1xf32> to vector<16x32xf32>
    %140 = arith.subf %127, %139 : vector<16x32xf32>
    %cst_52 = arith.constant 9.99999974E-6 : f32
    %141 = vector.broadcast %cst_52 : f32 to vector<16x1xf32>
    %142 = arith.addf %138, %141 : vector<16x1xf32>
    %143 = math.rsqrt %142 : vector<16x1xf32>
    %144 = vector.broadcast %143 : vector<16x1xf32> to vector<16x32xf32>
    %145 = arith.mulf %140, %144 : vector<16x32xf32>
    %146 = vector.broadcast %50 : vector<1x32xf32> to vector<16x32xf32>
    %147 = arith.mulf %145, %146 : vector<16x32xf32>
    %148 = vector.broadcast %51 : vector<1x32xf32> to vector<16x32xf32>
    %149 = arith.addf %147, %148 : vector<16x32xf32>
    %c1 = arith.constant 1 : index
    %c0_53 = arith.constant 0 : index
    %c0_54 = arith.constant 0 : index
    %c0_55 = arith.constant 0 : index
    %150 = vector.load %arg2[%c1, %c0_53, %c0_54, %c0_55] : memref<2x3x32x32xf32, #tpu.memory_space<vmem>>, vector<1x3x32x32xf32>
    %151 = vector.shape_cast %150 : vector<1x3x32x32xf32> to vector<3x32x32xf32>
    %c1_56 = arith.constant 1 : index
    %c0_57 = arith.constant 0 : index
    %c0_58 = arith.constant 0 : index
    %152 = vector.load %arg7[%c1_56, %c0_57, %c0_58] : memref<2x9x32xf32, #tpu.memory_space<vmem>>, vector<1x9x32xf32>
    %153 = vector.shape_cast %152 : vector<1x9x32xf32> to vector<9x32xf32>
    %154 = vector.extract_strided_slice %153 {offsets = [0, 0], sizes = [1, 32], strides = [1, 1]} : vector<9x32xf32> to vector<1x32xf32>
    %155 = vector.extract_strided_slice %153 {offsets = [1, 0], sizes = [1, 32], strides = [1, 1]} : vector<9x32xf32> to vector<1x32xf32>
    %156 = vector.extract_strided_slice %153 {offsets = [2, 0], sizes = [1, 32], strides = [1, 1]} : vector<9x32xf32> to vector<1x32xf32>
    %157 = vector.extract_strided_slice %153 {offsets = [3, 0], sizes = [1, 32], strides = [1, 1]} : vector<9x32xf32> to vector<1x32xf32>
    %158 = vector.extract_strided_slice %153 {offsets = [4, 0], sizes = [1, 32], strides = [1, 1]} : vector<9x32xf32> to vector<1x32xf32>
    %159 = vector.extract_strided_slice %153 {offsets = [5, 0], sizes = [1, 32], strides = [1, 1]} : vector<9x32xf32> to vector<1x32xf32>
    %160 = vector.extract_strided_slice %153 {offsets = [6, 0], sizes = [1, 32], strides = [1, 1]} : vector<9x32xf32> to vector<1x32xf32>
    %161 = vector.extract_strided_slice %153 {offsets = [7, 0], sizes = [1, 32], strides = [1, 1]} : vector<9x32xf32> to vector<1x32xf32>
    %162 = vector.extract_strided_slice %153 {offsets = [8, 0], sizes = [1, 32], strides = [1, 1]} : vector<9x32xf32> to vector<1x32xf32>
    %163 = vector.extract_strided_slice %151 {offsets = [0, 0, 0], sizes = [1, 32, 32], strides = [1, 1, 1]} : vector<3x32x32xf32> to vector<1x32x32xf32>
    %164 = vector.shape_cast %163 : vector<1x32x32xf32> to vector<32x32xf32>
    %cst_59 = arith.constant dense<0.000000e+00> : vector<16x32xf32>
    %165 = tpu.matmul %149, %164, %cst_59 {dimension_numbers = #tpu.dot_dimension_numbers<[1], [0], [0], [1], [0, 0, 1, 1], [], []>} : vector<16x32xf32>, vector<32x32xf32>, vector<16x32xf32> -> vector<16x32xf32>
    %166 = vector.broadcast %154 : vector<1x32xf32> to vector<16x32xf32>
    %167 = arith.addf %165, %166 : vector<16x32xf32>
    %168 = vector.extract_strided_slice %151 {offsets = [1, 0, 0], sizes = [1, 32, 32], strides = [1, 1, 1]} : vector<3x32x32xf32> to vector<1x32x32xf32>
    %169 = vector.shape_cast %168 : vector<1x32x32xf32> to vector<32x32xf32>
    %cst_60 = arith.constant dense<0.000000e+00> : vector<16x32xf32>
    %170 = tpu.matmul %149, %169, %cst_60 {dimension_numbers = #tpu.dot_dimension_numbers<[1], [0], [0], [1], [0, 0, 1, 1], [], []>} : vector<16x32xf32>, vector<32x32xf32>, vector<16x32xf32> -> vector<16x32xf32>
    %171 = vector.broadcast %155 : vector<1x32xf32> to vector<16x32xf32>
    %172 = arith.addf %170, %171 : vector<16x32xf32>
    %173 = vector.extract_strided_slice %151 {offsets = [2, 0, 0], sizes = [1, 32, 32], strides = [1, 1, 1]} : vector<3x32x32xf32> to vector<1x32x32xf32>
    %174 = vector.shape_cast %173 : vector<1x32x32xf32> to vector<32x32xf32>
    %cst_61 = arith.constant dense<0.000000e+00> : vector<16x32xf32>
    %175 = tpu.matmul %149, %174, %cst_61 {dimension_numbers = #tpu.dot_dimension_numbers<[1], [0], [0], [1], [0, 0, 1, 1], [], []>} : vector<16x32xf32>, vector<32x32xf32>, vector<16x32xf32> -> vector<16x32xf32>
    %176 = vector.broadcast %156 : vector<1x32xf32> to vector<16x32xf32>
    %177 = arith.addf %175, %176 : vector<16x32xf32>
    %178 = vector.shape_cast %167 : vector<16x32xf32> to vector<16x4x8xf32>
    %179 = vector.shape_cast %172 : vector<16x32xf32> to vector<16x4x8xf32>
    %180 = vector.shape_cast %177 : vector<16x32xf32> to vector<16x4x8xf32>
    "tpu.trace_start"() <{level = 10 : i32, message = "qhd,khd->hqk"}> : () -> ()
    %cst_62 = arith.constant dense<0.000000e+00> : vector<4x16x16xf32>
    %181 = tpu.matmul %178, %179, %cst_62 {dimension_numbers = #tpu.dot_dimension_numbers<[2], [2], [0], [0], [0, 1, 0, 0, 1, 0], [1], [1]>} : vector<16x4x8xf32>, vector<16x4x8xf32>, vector<4x16x16xf32> -> vector<4x16x16xf32>
    "tpu.trace_stop"() : () -> ()
    %182 = vector.shape_cast %38 : vector<16x16xf32> to vector<1x16x16xf32>
    %183 = vector.broadcast %182 : vector<1x16x16xf32> to vector<4x16x16xf32>
    %184 = arith.addf %181, %183 : vector<4x16x16xf32>
    %cst_63 = arith.constant dense<0xFF800000> : vector<4x16xf32>
    %185 = vector.multi_reduction <maximumf>, %184, %cst_63 [2] : vector<4x16x16xf32> to vector<4x16xf32>
    %186 = vector.shape_cast %185 : vector<4x16xf32> to vector<4x16x1xf32>
    %187 = vector.broadcast %186 : vector<4x16x1xf32> to vector<4x16x16xf32>
    %188 = arith.subf %184, %187 : vector<4x16x16xf32>
    %189 = math.exp %188 : vector<4x16x16xf32>
    %cst_64 = arith.constant dense<0.000000e+00> : vector<4x16xf32>
    %190 = vector.multi_reduction <add>, %189, %cst_64 [2] : vector<4x16x16xf32> to vector<4x16xf32>
    %191 = vector.shape_cast %190 : vector<4x16xf32> to vector<4x16x1xf32>
    %192 = vector.broadcast %191 : vector<4x16x1xf32> to vector<4x16x16xf32>
    %193 = arith.divf %189, %192 : vector<4x16x16xf32>
    "tpu.trace_start"() <{level = 10 : i32, message = "hqk,khd->hqd"}> : () -> ()
    %cst_65 = arith.constant dense<0.000000e+00> : vector<4x16x8xf32>
    %194 = tpu.matmul %193, %180, %cst_65 {dimension_numbers = #tpu.dot_dimension_numbers<[2], [0], [1], [2], [0, 0, 0, 1, 1, 2], [0], [1]>} : vector<4x16x16xf32>, vector<16x4x8xf32>, vector<4x16x8xf32> -> vector<4x16x8xf32>
    "tpu.trace_stop"() : () -> ()
    %c1_66 = arith.constant 1 : index
    %c0_67 = arith.constant 0 : index
    %c0_68 = arith.constant 0 : index
    %c0_69 = arith.constant 0 : index
    %195 = vector.load %arg3[%c1_66, %c0_67, %c0_68, %c0_69] : memref<2x4x8x32xf32, #tpu.memory_space<vmem>>, vector<1x4x8x32xf32>
    %196 = vector.shape_cast %195 : vector<1x4x8x32xf32> to vector<4x8x32xf32>
    "tpu.trace_start"() <{level = 10 : i32, message = "hqd,hde->hqe"}> : () -> ()
    %cst_70 = arith.constant dense<0.000000e+00> : vector<4x16x32xf32>
    %197 = tpu.matmul %194, %196, %cst_70 {dimension_numbers = #tpu.dot_dimension_numbers<[2], [1], [1], [2], [0, 0, 0, 1, 1, 2], [0], [0]>} : vector<4x16x8xf32>, vector<4x8x32xf32>, vector<4x16x32xf32> -> vector<4x16x32xf32>
    "tpu.trace_stop"() : () -> ()
    %cst_71 = arith.constant dense<0.000000e+00> : vector<16x32xf32>
    %198 = vector.multi_reduction <add>, %197, %cst_71 [0] : vector<4x16x32xf32> to vector<16x32xf32>
    %199 = vector.broadcast %157 : vector<1x32xf32> to vector<16x32xf32>
    %200 = arith.addf %198, %199 : vector<16x32xf32>
    %201 = arith.addf %200, %149 : vector<16x32xf32>
    %cst_72 = arith.constant dense<0.000000e+00> : vector<16xf32>
    %202 = vector.multi_reduction <add>, %201, %cst_72 [1] : vector<16x32xf32> to vector<16xf32>
    %203 = vector.shape_cast %202 : vector<16xf32> to vector<16x1xf32>
    %cst_73 = arith.constant 3.200000e+01 : f32
    %204 = vector.broadcast %cst_73 : f32 to vector<16x1xf32>
    %205 = arith.divf %203, %204 : vector<16x1xf32>
    %206 = vector.broadcast %205 : vector<16x1xf32> to vector<16x32xf32>
    %207 = arith.subf %201, %206 : vector<16x32xf32>
    %208 = arith.mulf %207, %207 : vector<16x32xf32>
    %cst_74 = arith.constant dense<0.000000e+00> : vector<16xf32>
    %209 = vector.multi_reduction <add>, %208, %cst_74 [1] : vector<16x32xf32> to vector<16xf32>
    %210 = vector.shape_cast %209 : vector<16xf32> to vector<16x1xf32>
    %cst_75 = arith.constant 3.200000e+01 : f32
    %211 = vector.broadcast %cst_75 : f32 to vector<16x1xf32>
    %212 = arith.divf %210, %211 : vector<16x1xf32>
    %213 = vector.broadcast %205 : vector<16x1xf32> to vector<16x32xf32>
    %214 = arith.subf %201, %213 : vector<16x32xf32>
    %cst_76 = arith.constant 9.99999974E-6 : f32
    %215 = vector.broadcast %cst_76 : f32 to vector<16x1xf32>
    %216 = arith.addf %212, %215 : vector<16x1xf32>
    %217 = math.rsqrt %216 : vector<16x1xf32>
    %218 = vector.broadcast %217 : vector<16x1xf32> to vector<16x32xf32>
    %219 = arith.mulf %214, %218 : vector<16x32xf32>
    %220 = vector.broadcast %158 : vector<1x32xf32> to vector<16x32xf32>
    %221 = arith.mulf %219, %220 : vector<16x32xf32>
    %222 = vector.broadcast %159 : vector<1x32xf32> to vector<16x32xf32>
    %223 = arith.addf %221, %222 : vector<16x32xf32>
    %c1_77 = arith.constant 1 : index
    %c0_78 = arith.constant 0 : index
    %c0_79 = arith.constant 0 : index
    %224 = vector.load %arg4[%c1_77, %c0_78, %c0_79] : memref<2x32x128xf32, #tpu.memory_space<vmem>>, vector<1x32x128xf32>
    %225 = vector.shape_cast %224 : vector<1x32x128xf32> to vector<32x128xf32>
    %cst_80 = arith.constant dense<0.000000e+00> : vector<16x128xf32>
    %226 = tpu.matmul %223, %225, %cst_80 {dimension_numbers = #tpu.dot_dimension_numbers<[1], [0], [0], [1], [0, 0, 1, 1], [], []>} : vector<16x32xf32>, vector<32x128xf32>, vector<16x128xf32> -> vector<16x128xf32>
    %c1_81 = arith.constant 1 : index
    %c0_82 = arith.constant 0 : index
    %c0_83 = arith.constant 0 : index
    %227 = vector.load %arg6[%c1_81, %c0_82, %c0_83] : memref<2x1x128xf32, #tpu.memory_space<vmem>>, vector<1x1x128xf32>
    %228 = vector.shape_cast %227 : vector<1x1x128xf32> to vector<1x128xf32>
    %229 = vector.broadcast %228 : vector<1x128xf32> to vector<16x128xf32>
    %230 = arith.addf %226, %229 : vector<16x128xf32>
    %cst_84 = arith.constant 0.000000e+00 : f32
    %231 = vector.broadcast %cst_84 : f32 to vector<16x128xf32>
    %232 = arith.maximumf %230, %231 : vector<16x128xf32>
    %c1_85 = arith.constant 1 : index
    %c0_86 = arith.constant 0 : index
    %c0_87 = arith.constant 0 : index
    %233 = vector.load %arg5[%c1_85, %c0_86, %c0_87] : memref<2x128x32xf32, #tpu.memory_space<vmem>>, vector<1x128x32xf32>
    %234 = vector.shape_cast %233 : vector<1x128x32xf32> to vector<128x32xf32>
    %cst_88 = arith.constant dense<0.000000e+00> : vector<16x32xf32>
    %235 = tpu.matmul %232, %234, %cst_88 {dimension_numbers = #tpu.dot_dimension_numbers<[1], [0], [0], [1], [0, 0, 1, 1], [], []>} : vector<16x128xf32>, vector<128x32xf32>, vector<16x32xf32> -> vector<16x32xf32>
    %236 = vector.broadcast %160 : vector<1x32xf32> to vector<16x32xf32>
    %237 = arith.addf %235, %236 : vector<16x32xf32>
    %238 = arith.addf %237, %223 : vector<16x32xf32>
    %cst_89 = arith.constant dense<0.000000e+00> : vector<16xf32>
    %239 = vector.multi_reduction <add>, %238, %cst_89 [1] : vector<16x32xf32> to vector<16xf32>
    %240 = vector.shape_cast %239 : vector<16xf32> to vector<16x1xf32>
    %cst_90 = arith.constant 3.200000e+01 : f32
    %241 = vector.broadcast %cst_90 : f32 to vector<16x1xf32>
    %242 = arith.divf %240, %241 : vector<16x1xf32>
    %243 = vector.broadcast %242 : vector<16x1xf32> to vector<16x32xf32>
    %244 = arith.subf %238, %243 : vector<16x32xf32>
    %245 = arith.mulf %244, %244 : vector<16x32xf32>
    %cst_91 = arith.constant dense<0.000000e+00> : vector<16xf32>
    %246 = vector.multi_reduction <add>, %245, %cst_91 [1] : vector<16x32xf32> to vector<16xf32>
    %247 = vector.shape_cast %246 : vector<16xf32> to vector<16x1xf32>
    %cst_92 = arith.constant 3.200000e+01 : f32
    %248 = vector.broadcast %cst_92 : f32 to vector<16x1xf32>
    %249 = arith.divf %247, %248 : vector<16x1xf32>
    %250 = vector.broadcast %242 : vector<16x1xf32> to vector<16x32xf32>
    %251 = arith.subf %238, %250 : vector<16x32xf32>
    %cst_93 = arith.constant 9.99999974E-6 : f32
    %252 = vector.broadcast %cst_93 : f32 to vector<16x1xf32>
    %253 = arith.addf %249, %252 : vector<16x1xf32>
    %254 = math.rsqrt %253 : vector<16x1xf32>
    %255 = vector.broadcast %254 : vector<16x1xf32> to vector<16x32xf32>
    %256 = arith.mulf %251, %255 : vector<16x32xf32>
    %257 = vector.broadcast %161 : vector<1x32xf32> to vector<16x32xf32>
    %258 = arith.mulf %256, %257 : vector<16x32xf32>
    %259 = vector.broadcast %162 : vector<1x32xf32> to vector<16x32xf32>
    %260 = arith.addf %258, %259 : vector<16x32xf32>
    %c0_94 = arith.constant 0 : index
    %c0_95 = arith.constant 0 : index
    %261 = vector.load %arg8[%c0_94, %c0_95] : memref<16x32xf32, #tpu.memory_space<vmem>>, vector<16x32xf32>
    tpu.vector_store %arg8[%c0_94, %c0_95], %260 {strides = array<i32>} : memref<16x32xf32, #tpu.memory_space<vmem>>, vector<16x32xf32>,
    return
  }
  func.func @transform_0(%arg0: i32) -> (i32, i32) {
    %c0_i32 = arith.constant 0 : i32
    %c0_i32_0 = arith.constant 0 : i32
    %c0_i32_1 = arith.constant 0 : i32
    return %c0_i32, %c0_i32_0 : i32, i32
  }
  func.func @transform_1(%arg0: i32) -> (i32, i32, i32, i32) {
    %c0_i32 = arith.constant 0 : i32
    %c0_i32_0 = arith.constant 0 : i32
    %c0_i32_1 = arith.constant 0 : i32
    %c0_i32_2 = arith.constant 0 : i32
    %c0_i32_3 = arith.constant 0 : i32
    return %c0_i32, %c0_i32_0, %c0_i32_1, %c0_i32_2 : i32, i32, i32, i32
  }
  func.func @transform_2(%arg0: i32) -> (i32, i32, i32, i32) {
    %c0_i32 = arith.constant 0 : i32
    %c0_i32_0 = arith.constant 0 : i32
    %c0_i32_1 = arith.constant 0 : i32
    %c0_i32_2 = arith.constant 0 : i32
    %c0_i32_3 = arith.constant 0 : i32
    return %c0_i32, %c0_i32_0, %c0_i32_1, %c0_i32_2 : i32, i32, i32, i32
  }
  func.func @transform_3(%arg0: i32) -> (i32, i32, i32) {
    %c0_i32 = arith.constant 0 : i32
    %c0_i32_0 = arith.constant 0 : i32
    %c0_i32_1 = arith.constant 0 : i32
    %c0_i32_2 = arith.constant 0 : i32
    return %c0_i32, %c0_i32_0, %c0_i32_1 : i32, i32, i32
  }
  func.func @transform_4(%arg0: i32) -> (i32, i32, i32) {
    %c0_i32 = arith.constant 0 : i32
    %c0_i32_0 = arith.constant 0 : i32
    %c0_i32_1 = arith.constant 0 : i32
    %c0_i32_2 = arith.constant 0 : i32
    return %c0_i32, %c0_i32_0, %c0_i32_1 : i32, i32, i32
  }
  func.func @transform_5(%arg0: i32) -> (i32, i32, i32) {
    %c0_i32 = arith.constant 0 : i32
    %c0_i32_0 = arith.constant 0 : i32
    %c0_i32_1 = arith.constant 0 : i32
    %c0_i32_2 = arith.constant 0 : i32
    return %c0_i32, %c0_i32_0, %c0_i32_1 : i32, i32, i32
  }
  func.func @transform_6(%arg0: i32) -> (i32, i32, i32) {
    %c0_i32 = arith.constant 0 : i32
    %c0_i32_0 = arith.constant 0 : i32
    %c0_i32_1 = arith.constant 0 : i32
    %c0_i32_2 = arith.constant 0 : i32
    return %c0_i32, %c0_i32_0, %c0_i32_1 : i32, i32, i32
  }
  func.func @transform_7(%arg0: i32) -> (i32, i32) {
    %c0_i32 = arith.constant 0 : i32
    %c0_i32_0 = arith.constant 0 : i32
    %c0_i32_1 = arith.constant 0 : i32
    return %c0_i32, %c0_i32_0 : i32, i32
  }
}

</mosaic_0001>

<bundles_post_ra>
// kernel: transformer_encoder.1
= control target key start
LH: loop header
LB: loop body
LE: loop exit
PB: predicated region body
PF: predicated region fallthrough
CT: control target
= control target key end

     0   :  { %vm92_vm0 = vcmask 261120   ;;  %s4979_s0 = inlined_call_operand.vmem [shape: f32[16,32], index: 0, kind: input, shape index: {}]   ;;  %s4980_s1 = inlined_call_operand.vmem [shape: f32[2,3,32,32], index: 1, kind: input, shape index: {}]   ;;  %s4981_s2 = inlined_call_operand.vmem [shape: f32[2,4,8,32], index: 2, kind: input, shape index: {}]   ;;  %s4982_s3 = inlined_call_operand.vmem [shape: f32[2,32,128], index: 3, kind: input, shape index: {}]   ;;  %s4983_s4 = inlined_call_operand.vmem [shape: f32[2,128,32], index: 4, kind: input, shape index: {}]   ;;  %s4984_s5 = inlined_call_operand.vmem [shape: f32[2,1,128], index: 5, kind: input, shape index: {}]   ;;  %s4985_s6 = inlined_call_operand.vmem [shape: f32[2,9,32], index: 6, kind: input, shape index: {}]   ;;  %s4986_s7 = inlined_call_operand.hbm [shape: f32[16,32], index: 7, kind: output, shape index: {}]  }
   0x1   :  { %v77_v0 = vld [vmem:[%s4980_s1 + $0x18] sm:$0xff]  ;;  %v76_v1 = vld [vmem:[%s4980_s1 + $0x10] sm:$0xff]  ;;  %v4401_v2 = vld [vmem:[%s4979_s0] sm:$0xff] }
   0x2   :  { %3941 = vmatprep.subr.mxu0 %v77_v0  ;;  %v75_v3 = vld [vmem:[%s4980_s1 + $0x8] sm:$0xff]  ;;  %3949 = vmatprep.mubr.msk.f32.mxu0 %vm92_vm0, %v4401_v2  ;;  %v74_v4 = vld [vmem:[%s4980_s1] sm:$0xff] }
   0x3   :  { %3942 = vmatpush3.msra.mxu0 %v77_v0 }
   0x4   :  { %3943 = vmatprep.subr.mxu0 %v76_v1 }
   0x5   :  { %3944 = vmatpush3.msra.mxu0 %v76_v1 }
   0x6   :  { %12 = vsyncpa [#allocation3], 0  ;;  %3945 = vmatprep.subr.mxu0 %v75_v3  ;;  %v4414_v5 = vld [vmem:[%s4979_s0 + $0x8] sm:$0xff]  ;;  %v81_v6 = vld [vmem:[%s4980_s1 + $0x38] sm:$0xff]  ;;  %v29_v14 = vlaneseq  ;;  %vm514_vm1 = vcmask 64512   ;;  %s4345_s30 = smov 112  }
   0x7   :  { %3946 = vmatpush3.msra.mxu0 %v75_v3  ;;  %v80_v7 = vld [vmem:[%s4980_s1 + $0x30] sm:$0xff]  ;;  %v79_v8 = vld [vmem:[%s4980_s1 + $0x28] sm:$0xff]  ;;  %v78_v9 = vld [vmem:[%s4980_s1 + $0x20] sm:$0xff]  ;;  %s4346_s8 = smov 120   ;;  %s4347_s9 = smov 104   ;;  %vm831_vm4 = vcmask 130048  }
   0x8   :  { %3947 = vmatprep.subr.mxu0 %v74_v4  ;;  %v85_v10 = vld [vmem:[%s4980_s1 + $0x58] sm:$0xff]  ;;  %v84_v11 = vld [vmem:[%s4980_s1 + $0x50] sm:$0xff]  ;;  %v83_v12 = vld [vmem:[%s4980_s1 + $0x48] sm:$0xff]  ;;  %v4451_v15 = vshrl.u32 %v29_v14, 7  ;;  %v57_v52 = vand.u32 127, %v29_v14 }
   0x9   :  { %3948 = vmatpush3.msra.mxu0 %v74_v4  ;;  %v82_v13 = vld [vmem:[%s4980_s1 + $0x40] sm:$0xff]  ;;  %v4348_v56 = vmov -1e+30  }
   0xa   :  { %3950 = vmatmul.mubr.msk.f32.vlgmr.msra.gmra.mxu0 %vm92_vm0, %v4414_v5  ;;  %3952 = vmatprep.subr.mxu0 %v81_v6  ;;  %v90_v16 = vsub.s32 0, %v4451_v15  ;;  %v4457_v17 = vld [vmem:[%s4985_s6] sm:$0xff]  ;;  %v176_v20 = vsub.s32 1, %v4451_v15  ;;  %v255_v41 = vsub.s32 2, %v4451_v15  ;;  %v31_v51 = vadd.s32 8, %v4451_v15 }
   0xb   :  { %3953 = vmatpush3.msra.mxu0 %v81_v6  ;;  %3960 = vmatprep.mubr.msk.f32.mxu0 %vm92_vm0, %v4401_v2  ;;  %v62_v54 = vand.u32 1, %v57_v52  ;;  %v36_v55 = vand.u32 1, %v4451_v15 }
   0xc   :  { %3954 = vmatprep.subr.mxu0 %v80_v7  ;;  %v91_v18 = vrot.slane %v4457_v17, %v90_v16  ;;  %v177_v23 = vrot.slane %v4457_v17, %v176_v20  ;;  %v256_v43 = vrot.slane %v4457_v17, %v255_v41  ;;  %v43_v53 = vand.u32 1, %v31_v51 }
   0xd   :  { %3955 = vmatpush3.msra.mxu0 %v80_v7  ;;  %vm70_vm3 = vcmp.eq.s32.totalorder %v36_v55, %v62_v54 }
   0xe   :  { %3956 = vmatprep.subr.mxu0 %v79_v8  ;;  %vm71_vm2 = vcmp.eq.s32.totalorder %v43_v53, %v62_v54  ;;  %v4503_v59 = vsel %vm70_vm3, 0.0, %v4348_v56 }
   0xf   :  { %3957 = vmatpush3.msra.mxu0 %v79_v8  ;;  %v4501_v57 = vsel %vm71_vm2, 0.0, %v4348_v56 }
  0x10   :  { %3958 = vmatprep.subr.mxu0 %v78_v9 }
  0x11   :  { %3959 = vmatpush3.msra.mxu0 %v78_v9 }
  0x12   :  { %3961 = vmatmul.mubr.msk.f32.vlgmr.msra.gmra.mxu0 %vm92_vm0, %v4414_v5  ;;  %3963 = vmatprep.subr.mxu0 %v85_v10 }
  0x13   :  { %3964 = vmatpush3.msra.mxu0 %v85_v10  ;;  %3971 = vmatprep.mubr.msk.f32.mxu0 %vm92_vm0, %v4401_v2 }
  0x14   :  { %3965 = vmatprep.subr.mxu0 %v84_v11 }
  0x15   :  { %3966 = vmatpush3.msra.mxu0 %v84_v11 }
  0x16   :  { %3967 = vmatprep.subr.mxu0 %v83_v12 }
  0x17   :  { %3968 = vmatpush3.msra.mxu0 %v83_v12 }
  0x18   :  { %3969 = vmatprep.subr.mxu0 %v82_v13 }
  0x19   :  { %3970 = vmatpush3.msra.mxu0 %v82_v13 }
  0x1a   :  { %3972 = vmatmul.mubr.msk.f32.vlgmr.msra.gmra.mxu0 %vm92_vm0, %v4414_v5 }
  0xca   :  { %v3951_v19 = vpop.f32.mrf.mxu0 }
  0xcb   :  { %v171_v28 = vadd.f32 %v3951_v19, %v91_v18 }
  0xcc   :  { %v165_v21 = vpop.f32.mrf.mxu0 }
  0xcd   :  { %v166_v22 = vadd.f32 %v165_v21, %v91_v18 }
  0xcf   :  { %3976 = vmatprep.mubr.msk.f32.mxu0 %vm514_vm1, %v166_v22 }
  0xd2   :  { %v3962_v24 = vpop.f32.mrf.mxu0 }
  0xd3   :  { %v250_v25 = vadd.f32 %v3962_v24, %v177_v23 }
  0xd4   :  { %v244_v26 = vpop.f32.mrf.mxu0 }
  0xd5   :  { %356 = vrot.lane.b32.xlu1 %v250_v25, %s4345_s30  ;;  %350 = vrot.lane.b32.xlu0 %v250_v25, %s4346_s8  ;;  %v245_v27 = vadd.f32 %v244_v26, %v177_v23 }
  0xd9   :  { %354 = vrot.lane.b32.xlu1 %v245_v27, %s4345_s30  ;;  %348 = vrot.lane.b32.xlu0 %v245_v27, %s4346_s8 }
  0xda   :  { %v3973_v44 = vpop.f32.mrf.mxu0 }
  0xdb   :  { %v4486_v47 = vadd.f32 %v3973_v44, %v256_v43 }
  0xdc   :  { %v323_v48 = vpop.f32.mrf.mxu0 }
  0xdd   :  { %362 = vrot.lane.b32.xlu1 %v250_v25, %s4347_s9  ;;  %360 = vrot.lane.b32.xlu0 %v245_v27, %s4347_s9  ;;  %v4488_v49 = vadd.f32 %v323_v48, %v256_v43 }
  0xe1   :  { %336 = vrot.lane.b32.xlu1 %v171_v28, %s4346_s8  ;;  %334 = vrot.lane.b32.xlu0 %v166_v22, %s4346_s8 }
  0xe5   :  { %340 = vrot.lane.b32.xlu1 %v171_v28, %s4345_s30  ;;  %338 = vrot.lane.b32.xlu0 %v166_v22, %s4345_s30 }
  0xe9   :  { %344 = vrot.lane.b32.xlu1 %v171_v28, %s4347_s9  ;;  %342 = vrot.lane.b32.xlu0 %v166_v22, %s4347_s9 }
 0x107   :  { %386 = vxpose.xlu0.b32.start [1/2] (short) (narrow) %v245_v27, 8 }
 0x10b   :  { %387 = vxpose.xlu0.b32.end [2/2] (short) (narrow) %v250_v25, 8 }
 0x147   :  { %v357_v29 = vpop.permute.xlu1 %356  ;;  %v351_v30 = vpop.permute.xlu0 %350 }
 0x14b   :  { %v355_v31 = vpop.permute.xlu1 %354  ;;  %v349_v32 = vpop.permute.xlu0 %348 }
 0x14c   :  { %418 = vxpose.xlu1.b32.start [1/2] (short) (narrow) %v349_v32, 8  ;;  %450 = vxpose.xlu0.b32.start [1/2] (short) (narrow) %v355_v31, 8 }
 0x14f   :  { %v361_v33 = vpop.permute.xlu0 %360  ;;  %v363_v35 = vpop.permute.xlu1 %362 }
 0x150   :  { %419 = vxpose.xlu1.b32.end [2/2] (short) (narrow) %v351_v30, 8  ;;  %451 = vxpose.xlu0.b32.end [2/2] (short) (narrow) %v357_v29, 8 }
 0x153   :  { %v335_v34 = vpop.permute.xlu0 %334  ;;  %v337_v39 = vpop.permute.xlu1 %336 }
 0x154   :  { %482 = vxpose.xlu0.b32.start [1/2] (short) (narrow) %v361_v33, 8  ;;  %3981 = vmatprep.mubr.msk.f32.mxu1 %vm514_vm1, %v335_v34 }
 0x157   :  { %v339_v36 = vpop.permute.xlu0 %338  ;;  %v341_v40 = vpop.permute.xlu1 %340 }
 0x158   :  { %483 = vxpose.xlu0.b32.end [2/2] (short) (narrow) %v363_v35, 8 }
 0x15b   :  { %v343_v37 = vpop.permute.xlu0 %342  ;;  %v345_v42 = vpop.permute.xlu1 %344 }
 0x183   :  { %v402_v38 = vpop.trf.xlu0 }
 0x184   :  { %3974 = vmatprep.subr.mxu0 %v402_v38 }
 0x185   :  { %3975 = vmatpush3.msra.mxu0 %v402_v38 }
 0x186   :  { %3977 = vmatmul.mubr.msk.f32.vlgmr.msra.gmra.mxu0 %vm514_vm1, %v171_v28 }
 0x187   :  { %3986 = vmatprep.mubr.msk.f32.mxu0 %vm514_vm1, %v339_v36 }
 0x1c8   :  { %v434_v45 = vpop.trf.xlu1  ;;  %v466_v46 = vpop.trf.xlu0 }
 0x1c9   :  { %3979 = vmatprep.subr.mxu1 %v434_v45  ;;  %3984 = vmatprep.subr.mxu0 %v466_v46 }
 0x1ca   :  { %3980 = vmatpush3.msra.mxu1 %v434_v45  ;;  %3985 = vmatpush3.msra.mxu0 %v466_v46 }
 0x1cb   :  { %3982 = vmatmul.mubr.msk.f32.vlgmr.msra.gmra.mxu1 %vm514_vm1, %v337_v39  ;;  %3987 = vmatmul.mubr.msk.f32.vlgmr.msra.gmra.mxu0 %vm514_vm1, %v341_v40 }
 0x1cc   :  { %3991 = vmatprep.mubr.msk.f32.mxu1 %vm514_vm1, %v343_v37  ;;  %3994 = vmatprep.subr.mxu0 %v4486_v47 }
 0x1cd   :  { %3995 = vmatpush3.msra.mxu0 %v4486_v47 }
 0x1ce   :  { %3996 = vmatprep.subr.mxu0 %v4488_v49 }
 0x1cf   :  { %3997 = vmatpush3.msra.mxu0 %v4488_v49 }
 0x1d0   :  { %v498_v50 = vpop.trf.xlu0 }
 0x1d1   :  { %3989 = vmatprep.subr.mxu1 %v498_v50 }
 0x1d2   :  { %3990 = vmatpush3.msra.mxu1 %v498_v50 }
 0x1d3   :  { %3992 = vmatmul.mubr.msk.f32.vlgmr.msra.gmra.mxu1 %vm514_vm1, %v345_v42 }
 0x246   :  { %v3978_v58 = vpop.f32.mrf.mxu0 }
 0x247   :  { %v591_v60 = vadd.f32 %v3978_v58, %v4501_v57 }
 0x248   :  { %v585_v61 = vpop.f32.mrf.mxu0 }
 0x249   :  { %v586_v62 = vadd.f32 %v585_v61, %v4503_v59  ;;  %v835_v63 = vsel %vm831_vm4, %v591_v60, -inf }
 0x24a   :  { %836 = vmax.xlane.f32.xlu0 %v835_v63 }
 0x24b   :  { %v832_v0 = vsel %vm831_vm4, %v586_v62, -inf }
 0x24c   :  { %833 = vmax.xlane.f32.xlu1 %v832_v0 }
 0x28b   :  { %v3983_v1 = vpop.f32.mrf.mxu1  ;;  %v3988_v3 = vpop.f32.mrf.mxu0 }
 0x28c   :  { %v670_v4 = vadd.f32 %v3983_v1, %v4501_v57  ;;  %v749_v6 = vadd.f32 %v3988_v3, %v4501_v57 }
 0x28d   :  { %v664_v7 = vpop.f32.mrf.mxu1  ;;  %v743_v11 = vpop.f32.mrf.mxu0 }
 0x28e   :  { %v665_v8 = vadd.f32 %v664_v7, %v4503_v59  ;;  %v847_v9 = vsel %vm831_vm4, %v749_v6, -inf  ;;  %v841_v10 = vsel %vm831_vm4, %v670_v4, -inf  ;;  %v744_v12 = vadd.f32 %v743_v11, %v4503_v59 }
 0x28f   :  { %848 = vmax.xlane.f32.xlu0 %v847_v9  ;;  %842 = vmax.xlane.f32.xlu1 %v841_v10 }
 0x290   :  { %v838_v13 = vsel %vm831_vm4, %v665_v8, -inf  ;;  %v844_v23 = vsel %vm831_vm4, %v744_v12, -inf }
 0x293   :  { %v3993_v14 = vpop.f32.mrf.mxu1  ;;  %839 = vmax.xlane.f32.xlu1 %v838_v13 }
 0x294   :  { %v828_v18 = vadd.f32 %v3993_v14, %v4501_v57 }
 0x295   :  { %v822_v19 = vpop.f32.mrf.mxu1 }
 0x296   :  { %v823_v21 = vadd.f32 %v822_v19, %v4503_v59  ;;  %v853_v22 = vsel %vm831_vm4, %v828_v18, -inf }
 0x297   :  { %854 = vmax.xlane.f32.xlu0 %v853_v22  ;;  %845 = vmax.xlane.f32.xlu1 %v844_v23 }
 0x298   :  { %v850_v24 = vsel %vm831_vm4, %v823_v21, -inf }
 0x29b   :  { %851 = vmax.xlane.f32.xlu1 %v850_v24 }
 0x2ac   :  { %370 = vrot.lane.b32.xlu1 %v4486_v47, %s4346_s8 }
 0x2ad   :  { %368 = vrot.lane.b32.xlu0 %v4488_v49, %s4346_s8 }
 0x2b0   :  { %376 = vrot.lane.b32.xlu1 %v4486_v47, %s4345_s30 }
 0x2b4   :  { %374 = vrot.lane.b32.xlu1 %v4488_v49, %s4345_s30 }
 0x2d3   :  { %v837_v25 = vpop.xlane.xlu0 %836 }
 0x2d4   :  { %v857_v26 = vsub.f32 %v591_v60, %v837_v25 }
 0x2d5   :  { %v834_v27 = vpop.xlane.xlu1 %833 }
 0x2d6   :  { %v866_v28 = vmul.f32 1.442695, %v857_v26  ;;  %v856_v29 = vsub.f32 %v586_v62, %v834_v27 }
 0x2d8   :  { %4243 = vpow2.f32 %v866_v28  ;;  %v864_v30 = vmul.f32 1.442695, %v856_v29  ;;  %v1244_v28 = vld [vmem:[%s4981_s2] sm:$0xff] }
 0x2da   :  { %4245 = vpow2.f32 %v864_v30 }
 0x2e5   :  { %v4529_v31 = vpop.eup %4243 }
 0x2e6   :  { %v883_v32 = vsel %vm831_vm4, %v4529_v31, 0.0 }
 0x2e7   :  { %v4533_v33 = vpop.eup %4245  ;;  %884 = vadd.xlane.f32.xlu0 %v883_v32 }
 0x2e8   :  { %v880_v34 = vsel %vm831_vm4, %v4533_v33, 0.0 }
 0x2e9   :  { %881 = vadd.xlane.f32.xlu1 %v880_v34 }
 0x318   :  { %v849_v35 = vpop.xlane.xlu0 %848  ;;  %v843_v36 = vpop.xlane.xlu1 %842 }
 0x319   :  { %v861_v37 = vsub.f32 %v749_v6, %v849_v35  ;;  %v859_v38 = vsub.f32 %v670_v4, %v843_v36 }
 0x31b   :  { %v870_v39 = vmul.f32 1.442695, %v859_v38  ;;  %v874_v40 = vmul.f32 1.442695, %v861_v37 }
 0x31c   :  { %v840_v42 = vpop.xlane.xlu1 %839 }
 0x31d   :  { %v858_v43 = vsub.f32 %v665_v8, %v840_v42  ;;  %4247 = vpow2.f32 %v870_v39  ;;  %v1245_v42 = vld [vmem:[%s4981_s2 + $0x8] sm:$0xff] }
 0x31e   :  { %4249 = vpow2.f32 %v874_v40 }
 0x31f   :  { %v868_v44 = vmul.f32 1.442695, %v858_v43  ;;  %v1246_v43 = vld [vmem:[%s4981_s2 + $0x10] sm:$0xff] }
 0x320   :  { %v855_v45 = vpop.xlane.xlu0 %854  ;;  %v846_v46 = vpop.xlane.xlu1 %845 }
 0x321   :  { %4251 = vpow2.f32 %v868_v44  ;;  %v863_v48 = vsub.f32 %v828_v18, %v855_v45  ;;  %v860_v50 = vsub.f32 %v744_v12, %v846_v46  ;;  %v1247_v44 = vld [vmem:[%s4981_s2 + $0x18] sm:$0xff] }
 0x323   :  { %v878_v51 = vmul.f32 1.442695, %v863_v48  ;;  %v872_v52 = vmul.f32 1.442695, %v860_v50 }
 0x324   :  { %v852_v53 = vpop.xlane.xlu1 %851  ;;  %v369_v58 = vpop.permute.xlu0 %368 }
 0x325   :  { %4253 = vpow2.f32 %v878_v51  ;;  %v862_v54 = vsub.f32 %v823_v21, %v852_v53 }
 0x326   :  { %4255 = vpow2.f32 %v872_v52 }
 0x327   :  { %v876_v55 = vmul.f32 1.442695, %v862_v54 }
 0x328   :  { %v371_v56 = vpop.permute.xlu1 %370 }
 0x329   :  { %4257 = vpow2.f32 %v876_v55  ;;  %4001 = vmatprep.subr.mxu1 %v371_v56 }
 0x32a   :  { %4002 = vmatpush3.msra.mxu1 %v371_v56  ;;  %v4248_v60 = vpop.eup %4247 }
 0x32b   :  { %4003 = vmatprep.subr.mxu1 %v369_v58  ;;  %v889_v61 = vsel %vm831_vm4, %v4248_v60, 0.0  ;;  %v4538_v63 = vpop.eup %4249 }
 0x32c   :  { %4004 = vmatpush3.msra.mxu1 %v369_v58  ;;  %v377_v62 = vpop.permute.xlu1 %376  ;;  %890 = vadd.xlane.f32.xlu0 %v889_v61  ;;  %v895_v3 = vsel %vm831_vm4, %v4538_v63, 0.0 }
 0x32d   :  { %4008 = vmatprep.subr.mxu0 %v377_v62 }
 0x32e   :  { %v4252_v0 = vpop.eup %4251 }
 0x32f   :  { %v886_v1 = vsel %vm831_vm4, %v4252_v0, 0.0 }
 0x330   :  { %887 = vadd.xlane.f32.xlu1 %v886_v1  ;;  %896 = vadd.xlane.f32.xlu0 %v895_v3  ;;  %v375_v11 = vpop.permute.xlu1 %374 }
 0x332   :  { %v4254_v4 = vpop.eup %4253 }
 0x333   :  { %v4256_v6 = vpop.eup %4255  ;;  %v901_v7 = vsel %vm831_vm4, %v4254_v4, 0.0 }
 0x334   :  { %v892_v8 = vsel %vm831_vm4, %v4256_v6, 0.0  ;;  %902 = vadd.xlane.f32.xlu0 %v901_v7 }
 0x335   :  { %893 = vadd.xlane.f32.xlu1 %v892_v8 }
 0x336   :  { %v4258_v9 = vpop.eup %4257 }
 0x337   :  { %v898_v10 = vsel %vm831_vm4, %v4258_v9, 0.0 }
 0x339   :  { %899 = vadd.xlane.f32.xlu1 %v898_v10 }
 0x34a   :  { %380 = vrot.lane.b32.xlu1 %v4488_v49, %s4347_s9  ;;  %382 = vrot.lane.b32.xlu0 %v4486_v47, %s4347_s9 }
 0x370   :  { %v885_v12 = vpop.xlane.xlu0 %884 }
 0x371   :  { %4259 = vrcp.f32 %v885_v12 }
 0x372   :  { %v882_v13 = vpop.xlane.xlu1 %881 }
 0x373   :  { %4261 = vrcp.f32 %v882_v13 }
 0x37e   :  { %v4260_v14 = vpop.eup %4259 }
 0x37f   :  { %v907_v21 = vmul.f32 %v4260_v14, %v4529_v31 }
 0x380   :  { %v4262_v18 = vpop.eup %4261 }
 0x381   :  { %v905_v19 = vmul.f32 %v4262_v18, %v4533_v33 }
 0x383   :  { %3998 = vmatprep.mubr.msk.f32.mxu0 %vm831_vm4, %v905_v19 }
 0x384   :  { %3999 = vmatmul.mubr.msk.f32.vlgmr.msra.gmra.mxu0 %vm831_vm4, %v907_v21 }
 0x385   :  { %4009 = vmatpush3.msra.mxu0 %v377_v62  ;;  %v1588_v62 = vsub.s32 3, %v4451_v15 }
 0x386   :  { %4010 = vmatprep.subr.mxu0 %v375_v11 }
 0x387   :  { %4011 = vmatpush3.msra.mxu0 %v375_v11  ;;  %v1589_v12 = vrot.slane %v4457_v17, %v1588_v62 }
 0x388   :  { %4022 = vmatprep.subr.mxu0 %v1244_v28 }
 0x3b5   :  { %v891_v49 = vpop.xlane.xlu0 %890 }
 0x3b6   :  { %4263 = vrcp.f32 %v891_v49 }
 0x3b9   :  { %v888_v47 = vpop.xlane.xlu1 %887  ;;  %v897_v22 = vpop.xlane.xlu0 %896 }
 0x3ba   :  { %4265 = vrcp.f32 %v888_v47 }
 0x3bb   :  { %4267 = vrcp.f32 %v897_v22 }
 0x3bd   :  { %v903_v23 = vpop.xlane.xlu0 %902 }
 0x3be   :  { %v894_v24 = vpop.xlane.xlu1 %893 }
 0x3bf   :  { %4269 = vrcp.f32 %v894_v24 }
 0x3c0   :  { %4271 = vrcp.f32 %v903_v23 }
 0x3c1   :  { %v383_v25 = vpop.permute.xlu0 %382 }
 0x3c2   :  { %v900_v26 = vpop.xlane.xlu1 %899  ;;  %4015 = vmatprep.subr.mxu1 %v383_v25 }
 0x3c3   :  { %4273 = vrcp.f32 %v900_v26  ;;  %v4264_v27 = vpop.eup %4263 }
 0x3c4   :  { %v911_v31 = vmul.f32 %v4264_v27, %v4248_v60 }
 0x3c6   :  { %v381_v33 = vpop.permute.xlu1 %380 }
 0x3c7   :  { %v4266_v29 = vpop.eup %4265 }
 0x3c8   :  { %v909_v30 = vmul.f32 %v4266_v29, %v4252_v0  ;;  %v4268_v32 = vpop.eup %4267 }
 0x3c9   :  { %v915_v37 = vmul.f32 %v4268_v32, %v4538_v63 }
 0x3ca   :  { %4005 = vmatprep.mubr.msk.f32.mxu1 %vm831_vm4, %v909_v30 }
 0x3cb   :  { %4006 = vmatmul.mubr.msk.f32.vlgmr.msra.gmra.mxu1 %vm831_vm4, %v911_v31 }
 0x3cc   :  { %4016 = vmatpush3.msra.mxu1 %v383_v25  ;;  %v4270_v34 = vpop.eup %4269 }
 0x3cd   :  { %4017 = vmatprep.subr.mxu1 %v381_v33  ;;  %v913_v35 = vmul.f32 %v4270_v34, %v4256_v6  ;;  %v4272_v36 = vpop.eup %4271 }
 0x3ce   :  { %4018 = vmatpush3.msra.mxu1 %v381_v33  ;;  %v919_v40 = vmul.f32 %v4272_v36, %v4254_v4  ;;  %v1635_v36 = vld [vmem:[%s4982_s3 + $0x10] sm:$0xff] }
 0x3cf   :  { %4012 = vmatprep.mubr.msk.f32.mxu0 %vm831_vm4, %v913_v35  ;;  %4027 = vmatprep.subr.mxu1 %v1245_v42  ;;  %v1636_v35 = vld [vmem:[%s4982_s3 + $0x18] sm:$0xff] }
 0x3d0   :  { %v4274_v38 = vpop.eup %4273  ;;  %4013 = vmatmul.mubr.msk.f32.vlgmr.msra.gmra.mxu0 %vm831_vm4, %v915_v37  ;;  %v1634_v37 = vld [vmem:[%s4982_s3 + $0x8] sm:$0xff] }
 0x3d1   :  { %v917_v39 = vmul.f32 %v4274_v38, %v4258_v9  ;;  %4023 = vmatpush3.msra.mxu0 %v1244_v28  ;;  %v1633_v38 = vld [vmem:[%s4982_s3] sm:$0xff] }
 0x3d2   :  { %4032 = vmatprep.subr.mxu0 %v1246_v43 }
 0x3d3   :  { %4019 = vmatprep.mubr.msk.f32.mxu1 %vm831_vm4, %v917_v39  ;;  %v1742_v39 = vld [vmem:[%s4983_s4 + $0x78] sm:$0xff] }
 0x3d4   :  { %4020 = vmatmul.mubr.msk.f32.vlgmr.msra.gmra.mxu1 %vm831_vm4, %v919_v40  ;;  %v1741_v40 = vld [vmem:[%s4983_s4 + $0x70] sm:$0xff] }
 0x3d5   :  { %4028 = vmatpush3.msra.mxu1 %v1245_v42  ;;  %v1740_v42 = vld [vmem:[%s4983_s4 + $0x68] sm:$0xff] }
 0x3d6   :  { %4037 = vmatprep.subr.mxu1 %v1247_v44 }
 0x444   :  { %v4000_v45 = vpop.f32.mrf.mxu0 }
 0x446   :  { %v992_v46 = vpop.f32.mrf.mxu0 }
 0x447   :  { %4024 = vmatprep.mubr.msk.f32.mxu0 %vm514_vm1, %v992_v46  ;;  %v1736_v46 = vld [vmem:[%s4983_s4 + $0x48] sm:$0xff] }
 0x448   :  { %4025 = vmatmul.mubr.msk.f32.vlgmr.msra.gmra.mxu0 %vm514_vm1, %v4000_v45  ;;  %v1737_v45 = vld [vmem:[%s4983_s4 + $0x50] sm:$0xff] }
 0x449   :  { %4033 = vmatpush3.msra.mxu0 %v1246_v43  ;;  %v1739_v43 = vld [vmem:[%s4983_s4 + $0x60] sm:$0xff] }
 0x44a   :  { %4042 = vmatprep.subr.mxu0 %v1636_v35 }
 0x48b   :  { %v4007_v48 = vpop.f32.mrf.mxu1 }
 0x48d   :  { %v1073_v50 = vpop.f32.mrf.mxu1 }
 0x48e   :  { %4029 = vmatprep.mubr.msk.f32.mxu1 %vm514_vm1, %v1073_v50  ;;  %v1734_v50 = vld [vmem:[%s4983_s4 + $0x38] sm:$0xff] }
 0x48f   :  { %4030 = vmatmul.mubr.msk.f32.vlgmr.msra.gmra.mxu1 %vm514_vm1, %v4007_v48  ;;  %v1735_v48 = vld [vmem:[%s4983_s4 + $0x40] sm:$0xff] }
 0x490   :  { %4038 = vmatpush3.msra.mxu1 %v1247_v44  ;;  %v4014_v51 = vpop.f32.mrf.mxu0  ;;  %v1738_v44 = vld [vmem:[%s4983_s4 + $0x58] sm:$0xff] }
 0x491   :  { %4053 = vmatprep.subr.mxu1 %v1742_v39 }
 0x492   :  { %v1154_v52 = vpop.f32.mrf.mxu0 }
 0x493   :  { %4034 = vmatprep.mubr.msk.f32.mxu0 %vm514_vm1, %v1154_v52  ;;  %v1732_v52 = vld [vmem:[%s4983_s4 + $0x28] sm:$0xff] }
 0x494   :  { %v4021_v53 = vpop.f32.mrf.mxu1  ;;  %4035 = vmatmul.mubr.msk.f32.vlgmr.msra.gmra.mxu0 %vm514_vm1, %v4014_v51  ;;  %v1733_v51 = vld [vmem:[%s4983_s4 + $0x30] sm:$0xff] }
 0x495   :  { %4043 = vmatpush3.msra.mxu0 %v1636_v35 }
 0x496   :  { %v1235_v54 = vpop.f32.mrf.mxu1  ;;  %4044 = vmatprep.subr.mxu0 %v1635_v36 }
 0x497   :  { %4039 = vmatprep.mubr.msk.f32.mxu1 %vm514_vm1, %v1235_v54  ;;  %4045 = vmatpush3.msra.mxu0 %v1635_v36 }
 0x498   :  { %4040 = vmatmul.mubr.msk.f32.vlgmr.msra.gmra.mxu1 %vm514_vm1, %v4021_v53  ;;  %4046 = vmatprep.subr.mxu0 %v1634_v37  ;;  %v1731_v53 = vld [vmem:[%s4983_s4 + $0x20] sm:$0xff] }
 0x499   :  { %4047 = vmatpush3.msra.mxu0 %v1634_v37  ;;  %4054 = vmatpush3.msra.mxu1 %v1742_v39 }
 0x49a   :  { %4048 = vmatprep.subr.mxu0 %v1633_v38  ;;  %4055 = vmatprep.subr.mxu1 %v1741_v40 }
 0x49b   :  { %4049 = vmatpush3.msra.mxu0 %v1633_v38  ;;  %4056 = vmatpush3.msra.mxu1 %v1741_v40 }
 0x49c   :  { %4057 = vmatprep.subr.mxu1 %v1740_v42 }
 0x49d   :  { %4058 = vmatpush3.msra.mxu1 %v1740_v42 }
 0x49e   :  { %4059 = vmatprep.subr.mxu1 %v1739_v43 }
 0x49f   :  { %4060 = vmatpush3.msra.mxu1 %v1739_v43 }
 0x4a0   :  { %4061 = vmatprep.subr.mxu1 %v1738_v44 }
 0x4a1   :  { %4062 = vmatpush3.msra.mxu1 %v1738_v44 }
 0x4a2   :  { %4063 = vmatprep.subr.mxu1 %v1737_v45 }
 0x4a3   :  { %4064 = vmatpush3.msra.mxu1 %v1737_v45  ;;  %v3707_v45 = vld [vmem:[%s4980_s1 + $0x78] sm:$0xff] }
 0x4a4   :  { %4065 = vmatprep.subr.mxu1 %v1736_v46  ;;  %4088 = vmatprep.subr.mxu0 %v3707_v45 }
 0x4a5   :  { %4066 = vmatpush3.msra.mxu1 %v1736_v46  ;;  %v3706_v46 = vld [vmem:[%s4980_s1 + $0x70] sm:$0xff] }
 0x4a6   :  { %4067 = vmatprep.subr.mxu1 %v1735_v48 }
 0x4a7   :  { %4068 = vmatpush3.msra.mxu1 %v1735_v48  ;;  %v3705_v48 = vld [vmem:[%s4980_s1 + $0x68] sm:$0xff] }
 0x4a8   :  { %4069 = vmatprep.subr.mxu1 %v1734_v50 }
 0x4a9   :  { %4070 = vmatpush3.msra.mxu1 %v1734_v50  ;;  %v3704_v50 = vld [vmem:[%s4980_s1 + $0x60] sm:$0xff] }
 0x4aa   :  { %4071 = vmatprep.subr.mxu1 %v1733_v51 }
 0x4ab   :  { %4072 = vmatpush3.msra.mxu1 %v1733_v51  ;;  %v3711_v51 = vld [vmem:[%s4980_s1 + $0x98] sm:$0xff] }
 0x4ac   :  { %4073 = vmatprep.subr.mxu1 %v1732_v52 }
 0x4ad   :  { %4074 = vmatpush3.msra.mxu1 %v1732_v52 }
 0x4ae   :  { %4075 = vmatprep.subr.mxu1 %v1731_v53 }
 0x4af   :  { %4076 = vmatpush3.msra.mxu1 %v1731_v53 }
 0x508   :  { %v4026_v55 = vpop.f32.mrf.mxu0 }
 0x509   :  { %v1579_v63 = vsel %vm92_vm0, %v4026_v55, 0.0 }
 0x50a   :  { %v1320_v60 = vpop.f32.mrf.mxu0 }
 0x50b   :  { %v1572_v6 = vsel %vm92_vm0, %v1320_v60, 0.0 }
 0x54f   :  { %v4031_v56 = vpop.f32.mrf.mxu1 }
 0x550   :  { %v1580_v61 = vsel %vm92_vm0, %v4031_v56, 0.0 }
 0x551   :  { %v1401_v58 = vpop.f32.mrf.mxu1  ;;  %v1581_v3 = vadd.f32 %v1580_v61, %v1579_v63  ;;  %v1623_v63 = vsub.s32 4, %v4451_v15 }
 0x552   :  { %v1573_v0 = vsel %vm92_vm0, %v1401_v58, 0.0 }
 0x553   :  { %v1574_v8 = vadd.f32 %v1573_v0, %v1572_v6  ;;  %v1629_v0 = vsub.s32 5, %v4451_v15 }
 0x554   :  { %v4036_v1 = vpop.f32.mrf.mxu0 }
 0x555   :  { %v1582_v4 = vsel %vm92_vm0, %v4036_v1, 0.0  ;;  %v1624_v1 = vrot.slane %v4457_v17, %v1623_v63  ;;  %v1630_v6 = vrot.slane %v4457_v17, %v1629_v0 }
 0x556   :  { %v1482_v7 = vpop.f32.mrf.mxu0  ;;  %v1583_v9 = vadd.f32 %v1582_v4, %v1581_v3 }
 0x557   :  { %v1575_v10 = vsel %vm92_vm0, %v1482_v7, 0.0 }
 0x558   :  { %v4041_v11 = vpop.f32.mrf.mxu1  ;;  %v1576_v14 = vadd.f32 %v1575_v10, %v1574_v8 }
 0x559   :  { %v1584_v13 = vsel %vm92_vm0, %v4041_v11, 0.0 }
 0x55a   :  { %v1585_v18 = vadd.f32 %v1584_v13, %v1583_v9  ;;  %v1563_v19 = vpop.f32.mrf.mxu1  ;;  %v1730_v13 = vld [vmem:[%s4983_s4 + $0x18] sm:$0xff] }
 0x55b   :  { %v1577_v21 = vsel %vm92_vm0, %v1563_v19, 0.0  ;;  %4077 = vmatprep.subr.mxu1 %v1730_v13  ;;  %v1727_v19 = vld [vmem:[%s4983_s4] sm:$0xff] }
 0x55c   :  { %v1591_v49 = vadd.f32 %v1589_v12, %v1585_v18  ;;  %v1578_v47 = vadd.f32 %v1577_v21, %v1576_v14  ;;  %4078 = vmatpush3.msra.mxu1 %v1730_v13  ;;  %v1729_v14 = vld [vmem:[%s4983_s4 + $0x10] sm:$0xff]  ;;  %v1728_v18 = vld [vmem:[%s4983_s4 + $0x8] sm:$0xff]  ;;  %v3700_v21 = vld [vmem:[%s4984_s5] ss:$0 sm:$0xff] }
 0x55d   :  { %4079 = vmatprep.subr.mxu1 %v1729_v14  ;;  %v3708_v13 = vld [vmem:[%s4980_s1 + $0x80] sm:$0xff] }
 0x55e   :  { %v1590_v22 = vadd.f32 %v1589_v12, %v1578_v47  ;;  %v1593_v23 = vadd.f32 %v1591_v49, %v4414_v5  ;;  %4080 = vmatpush3.msra.mxu1 %v1729_v14  ;;  %v3715_v14 = vld [vmem:[%s4980_s1 + $0xb8] sm:$0xff] }
 0x55f   :  { %4081 = vmatprep.subr.mxu1 %v1728_v18 }
 0x560   :  { %v1597_v24 = vsel %vm92_vm0, %v1593_v23, 0.0  ;;  %v1592_v25 = vadd.f32 %v1590_v22, %v4401_v2  ;;  %4082 = vmatpush3.msra.mxu1 %v1728_v18  ;;  %v3714_v18 = vld [vmem:[%s4980_s1 + $0xb0] sm:$0xff] }
 0x561   :  { %1598 = vadd.xlane.f32.xlu1 %v1597_v24  ;;  %4083 = vmatprep.subr.mxu1 %v1727_v19 }
 0x562   :  { %v1594_v26 = vsel %vm92_vm0, %v1592_v25, 0.0  ;;  %4084 = vmatpush3.msra.mxu1 %v1727_v19  ;;  %v3713_v19 = vld [vmem:[%s4980_s1 + $0xa8] sm:$0xff] }
 0x563   :  { %1595 = vadd.xlane.f32.xlu0 %v1594_v26  ;;  %v1745_v26 = vsub.s32 6, %v4451_v15 }
 0x5ea   :  { %v1599_v27 = vpop.xlane.xlu1 %1598 }
 0x5eb   :  { %v1602_v28 = vmul.f32 0.03125, %v1599_v27  ;;  %v1746_v27 = vrot.slane %v4457_v17, %v1745_v26 }
 0x5ec   :  { %v1596_v29 = vpop.xlane.xlu0 %1595 }
 0x5ed   :  { %v1601_v30 = vmul.f32 0.03125, %v1596_v29  ;;  %v4597_v31 = vsub.f32 %v1593_v23, %v1602_v28 }
 0x5ef   :  { %v4599_v32 = vsub.f32 %v1592_v25, %v1601_v30  ;;  %v1606_v2 = vmul.f32 %v4597_v31, %v4597_v31 }
 0x5f1   :  { %v1605_v33 = vmul.f32 %v4599_v32, %v4599_v32  ;;  %v1610_v34 = vsel %vm92_vm0, %v1606_v2, 0.0 }
 0x5f3   :  { %v1607_v5 = vsel %vm92_vm0, %v1605_v33, 0.0 }
 0x5f4   :  { %1608 = vadd.xlane.f32.xlu0 %v1607_v5 }
 0x5f8   :  { %1611 = vadd.xlane.f32.xlu0 %v1610_v34 }
 0x67d   :  { %v1609_v54 = vpop.xlane.xlu0 %1608 }
 0x67e   :  { %v1613_v55 = vmul.f32 0.03125, %v1609_v54 }
 0x680   :  { %v1615_v56 = vadd.f32 1e-05, %v1613_v55 }
 0x681   :  { %v1612_v58 = vpop.xlane.xlu0 %1611 }
 0x682   :  { %4275 = vrsqrt.f32 %v1615_v56  ;;  %v1614_v60 = vmul.f32 0.03125, %v1612_v58 }
 0x684   :  { %v1616_v61 = vadd.f32 1e-05, %v1614_v60  ;;  %v1852_v60 = vsub.s32 7, %v4451_v15 }
 0x686   :  { %4277 = vrsqrt.f32 %v1616_v61 }
 0x68f   :  { %v4276_v3 = vpop.eup %4275 }
 0x690   :  { %v1619_v4 = vmul.f32 %v4276_v3, %v4599_v32 }
 0x692   :  { %v1625_v7 = vmul.f32 %v1624_v1, %v1619_v4 }
 0x693   :  { %v4278_v8 = vpop.eup %4277 }
 0x694   :  { %v1620_v9 = vmul.f32 %v4278_v8, %v4597_v31  ;;  %v1631_v10 = vadd.f32 %v1630_v6, %v1625_v7  ;;  %v3703_v8 = vld [vmem:[%s4985_s6 + $0x8] ss:$0 sm:$0xff] }
 0x696   :  { %v1626_v11 = vmul.f32 %v1624_v1, %v1620_v9  ;;  %4050 = vmatprep.mubr.msk.f32.mxu0 %vm92_vm0, %v1631_v10  ;;  %v1853_v1 = vrot.slane %v4457_v17, %v1852_v60  ;;  %v3710_v17 = vld [vmem:[%s4980_s1 + $0x90] sm:$0xff] }
 0x698   :  { %v1632_v12 = vadd.f32 %v1630_v6, %v1626_v11 }
 0x69a   :  { %4051 = vmatmul.mubr.msk.f32.vlgmr.msra.gmra.mxu0 %vm92_vm0, %v1632_v12 }
 0x69b   :  { %4089 = vmatpush3.msra.mxu0 %v3707_v45 }
 0x69c   :  { %4090 = vmatprep.subr.mxu0 %v3706_v46 }
 0x69d   :  { %4091 = vmatpush3.msra.mxu0 %v3706_v46 }
 0x69e   :  { %4092 = vmatprep.subr.mxu0 %v3705_v48 }
 0x69f   :  { %4093 = vmatpush3.msra.mxu0 %v3705_v48 }
 0x6a0   :  { %4094 = vmatprep.subr.mxu0 %v3704_v50 }
 0x6a1   :  { %4095 = vmatpush3.msra.mxu0 %v3704_v50 }
 0x6a2   :  { %4099 = vmatprep.subr.mxu0 %v3711_v51 }
 0x75a   :  { %v4052_v49 = vpop.f32.mrf.mxu0 }
 0x75b   :  { %v1722_v47 = vadd.f32 %v4052_v49, %v3700_v21  ;;  %v4752_v49 = vld [vmem:[%s4985_s6 + $0x10] sm:$0xff] }
 0x75c   :  { %v1716_v22 = vpop.f32.mrf.mxu0 }
 0x75d   :  { %v1717_v23 = vadd.f32 %v3700_v21, %v1716_v22  ;;  %v1726_v25 = vmax.f32 %v1722_v47, 0.0  ;;  %v3712_v21 = vld [vmem:[%s4980_s1 + $0xa0] sm:$0xff]  ;;  %v1881_v22 = vrot.slane %v4752_v49, %v90_v16 }
 0x75f   :  { %v1725_v24 = vmax.f32 %v1717_v23, 0.0 }
 0x761   :  { %4085 = vmatprep.mubr.f32.mxu1 %v1725_v24 }
 0x762   :  { %4086 = vmatmul.mubr.f32.vlgmr.msra.gmra.mxu1 %v1726_v25  ;;  %v1966_v25 = vrot.slane %v4752_v49, %v176_v20 }
 0x822   :  { %v4087_v28 = vpop.f32.mrf.mxu1 }
 0x823   :  { %v1819_v29 = vadd.f32 %v4087_v28, %v1746_v27 }
 0x824   :  { %v1813_v30 = vpop.f32.mrf.mxu1 }
 0x825   :  { %v1814_v31 = vadd.f32 %v1813_v30, %v1746_v27  ;;  %v1823_v32 = vadd.f32 %v1819_v29, %v1632_v12  ;;  %v3709_v12 = vld [vmem:[%s4980_s1 + $0x88] sm:$0xff] }
 0x827   :  { %v1827_v33 = vsel %vm92_vm0, %v1823_v32, 0.0  ;;  %v1822_v5 = vadd.f32 %v1814_v31, %v1631_v10 }
 0x828   :  { %1828 = vadd.xlane.f32.xlu0 %v1827_v33 }
 0x829   :  { %v1824_v2 = vsel %vm92_vm0, %v1822_v5, 0.0 }
 0x82a   :  { %1825 = vadd.xlane.f32.xlu1 %v1824_v2 }
 0x8b1   :  { %v1829_v34 = vpop.xlane.xlu0 %1828 }
 0x8b2   :  { %v1831_v35 = vmul.f32 0.03125, %v1829_v34 }
 0x8b3   :  { %v1826_v36 = vpop.xlane.xlu1 %1825 }
 0x8b4   :  { %v1833_v37 = vsub.f32 %v1823_v32, %v1831_v35  ;;  %v1830_v38 = vmul.f32 0.03125, %v1826_v36 }
 0x8b6   :  { %v1832_v39 = vsub.f32 %v1822_v5, %v1830_v38  ;;  %v1835_v40 = vmul.f32 %v1833_v37, %v1833_v37 }
 0x8b8   :  { %v1839_v42 = vsel %vm92_vm0, %v1835_v40, 0.0  ;;  %v1834_v43 = vmul.f32 %v1832_v39, %v1832_v39 }
 0x8b9   :  { %1840 = vadd.xlane.f32.xlu0 %v1839_v42 }
 0x8ba   :  { %v1836_v44 = vsel %vm92_vm0, %v1834_v43, 0.0 }
 0x8bb   :  { %1837 = vadd.xlane.f32.xlu1 %v1836_v44  ;;  %v2045_v44 = vrot.slane %v4752_v49, %v255_v41 }
 0x942   :  { %v1841_v52 = vpop.xlane.xlu0 %1840 }
 0x943   :  { %v1843_v53 = vmul.f32 0.03125, %v1841_v52 }
 0x944   :  { %v1838_v54 = vpop.xlane.xlu1 %1837 }
 0x945   :  { %v1845_v55 = vadd.f32 1e-05, %v1843_v53  ;;  %v1842_v56 = vmul.f32 0.03125, %v1838_v54 }
 0x947   :  { %4279 = vrsqrt.f32 %v1845_v55  ;;  %v1844_v58 = vadd.f32 1e-05, %v1842_v56 }
 0x949   :  { %4281 = vrsqrt.f32 %v1844_v58 }
 0x954   :  { %v4280_v61 = vpop.eup %4279 }
 0x955   :  { %v1849_v3 = vmul.f32 %v4280_v61, %v1833_v37 }
 0x956   :  { %v4282_v4 = vpop.eup %4281 }
 0x957   :  { %v1848_v6 = vmul.f32 %v4282_v4, %v1832_v39  ;;  %v1855_v7 = vmul.f32 %v1853_v1, %v1849_v3 }
 0x959   :  { %v1854_v9 = vmul.f32 %v1853_v1, %v1848_v6  ;;  %v4714_v11 = vadd.f32 %v3703_v8, %v1855_v7 }
 0x95b   :  { %v4712_v10 = vadd.f32 %v3703_v8, %v1854_v9 }
 0x95d   :  { %4096 = vmatprep.mubr.msk.f32.mxu0 %vm92_vm0, %v4712_v10 }
 0x95e   :  { %4097 = vmatmul.mubr.msk.f32.vlgmr.msra.gmra.mxu0 %vm92_vm0, %v4714_v11 }
 0x95f   :  { %4100 = vmatpush3.msra.mxu0 %v3711_v51  ;;  %4107 = vmatprep.mubr.msk.f32.mxu0 %vm92_vm0, %v4712_v10 }
 0x960   :  { %4101 = vmatprep.subr.mxu0 %v3710_v17 }
 0x961   :  { %4102 = vmatpush3.msra.mxu0 %v3710_v17 }
 0x962   :  { %4103 = vmatprep.subr.mxu0 %v3709_v12 }
 0x963   :  { %4104 = vmatpush3.msra.mxu0 %v3709_v12 }
 0x964   :  { %4105 = vmatprep.subr.mxu0 %v3708_v13 }
 0x965   :  { %4106 = vmatpush3.msra.mxu0 %v3708_v13 }
 0x966   :  { %4108 = vmatmul.mubr.msk.f32.vlgmr.msra.gmra.mxu0 %vm92_vm0, %v4714_v11  ;;  %4110 = vmatprep.subr.mxu0 %v3715_v14 }
 0x967   :  { %4111 = vmatpush3.msra.mxu0 %v3715_v14  ;;  %4118 = vmatprep.mubr.msk.f32.mxu0 %vm92_vm0, %v4712_v10 }
 0x968   :  { %4112 = vmatprep.subr.mxu0 %v3714_v18 }
 0x969   :  { %4113 = vmatpush3.msra.mxu0 %v3714_v18 }
 0x96a   :  { %4114 = vmatprep.subr.mxu0 %v3713_v19 }
 0x96b   :  { %4115 = vmatpush3.msra.mxu0 %v3713_v19 }
 0x96c   :  { %4116 = vmatprep.subr.mxu0 %v3712_v21 }
 0x96d   :  { %4117 = vmatpush3.msra.mxu0 %v3712_v21 }
 0x96e   :  { %4119 = vmatmul.mubr.msk.f32.vlgmr.msra.gmra.mxu0 %vm92_vm0, %v4714_v11 }
 0xa1e   :  { %v4098_v47 = vpop.f32.mrf.mxu0 }
 0xa1f   :  { %v1960_v16 = vadd.f32 %v4098_v47, %v1881_v22 }
 0xa20   :  { %v1954_v23 = vpop.f32.mrf.mxu0 }
 0xa21   :  { %v1955_v24 = vadd.f32 %v1954_v23, %v1881_v22 }
 0xa23   :  { %4123 = vmatprep.mubr.msk.f32.mxu0 %vm514_vm1, %v1955_v24 }
 0xa26   :  { %v4109_v27 = vpop.f32.mrf.mxu0 }
 0xa27   :  { %v2039_v28 = vadd.f32 %v4109_v27, %v1966_v25 }
 0xa28   :  { %v2033_v29 = vpop.f32.mrf.mxu0 }
 0xa29   :  { %2145 = vrot.lane.b32.xlu1 %v2039_v28, %s4345_s30  ;;  %2139 = vrot.lane.b32.xlu0 %v2039_v28, %s4346_s8  ;;  %v2034_v30 = vadd.f32 %v2033_v29, %v1966_v25 }
 0xa2d   :  { %2149 = vrot.lane.b32.xlu0 %v2034_v30, %s4347_s9  ;;  %2137 = vrot.lane.b32.xlu1 %v2034_v30, %s4346_s8 }
 0xa2e   :  { %v4120_v42 = vpop.f32.mrf.mxu0 }
 0xa2f   :  { %v4781_v48 = vadd.f32 %v4120_v42, %v2045_v44 }
 0xa30   :  { %v2112_v45 = vpop.f32.mrf.mxu0 }
 0xa31   :  { %2143 = vrot.lane.b32.xlu1 %v2034_v30, %s4345_s30  ;;  %2123 = vrot.lane.b32.xlu0 %v1955_v24, %s4346_s8  ;;  %v4783_v50 = vadd.f32 %v2112_v45, %v2045_v44 }
 0xa35   :  { %2151 = vrot.lane.b32.xlu1 %v2039_v28, %s4347_s9  ;;  %2127 = vrot.lane.b32.xlu0 %v1955_v24, %s4345_s30 }
 0xa39   :  { %2125 = vrot.lane.b32.xlu1 %v1960_v16, %s4346_s8  ;;  %2131 = vrot.lane.b32.xlu0 %v1955_v24, %s4347_s9 }
 0xa3d   :  { %2129 = vrot.lane.b32.xlu1 %v1960_v16, %s4345_s30 }
 0xa41   :  { %2133 = vrot.lane.b32.xlu1 %v1960_v16, %s4347_s9 }
 0xa57   :  { %2175 = vxpose.xlu0.b32.start [1/2] (short) (narrow) %v2034_v30, 8 }
 0xa5b   :  { %2176 = vxpose.xlu0.b32.end [2/2] (short) (narrow) %v2039_v28, 8 }
 0xa9b   :  { %v2146_v20 = vpop.permute.xlu1 %2145  ;;  %v2140_v31 = vpop.permute.xlu0 %2139 }
 0xa9f   :  { %v2150_v32 = vpop.permute.xlu0 %2149  ;;  %v2138_v33 = vpop.permute.xlu1 %2137 }
 0xaa0   :  { %2207 = vxpose.xlu1.b32.start [1/2] (short) (narrow) %v2138_v33, 8 }
 0xaa3   :  { %v2144_v5 = vpop.permute.xlu1 %2143  ;;  %v2124_v2 = vpop.permute.xlu0 %2123 }
 0xaa4   :  { %2208 = vxpose.xlu1.b32.end [2/2] (short) (narrow) %v2140_v31, 8  ;;  %2239 = vxpose.xlu0.b32.start [1/2] (short) (narrow) %v2144_v5, 8 }
 0xaa5   :  { %4128 = vmatprep.mubr.msk.f32.mxu1 %vm514_vm1, %v2124_v2 }
 0xaa7   :  { %v2152_v34 = vpop.permute.xlu1 %2151  ;;  %v2128_v35 = vpop.permute.xlu0 %2127 }
 0xaa8   :  { %2240 = vxpose.xlu0.b32.end [2/2] (short) (narrow) %v2146_v20, 8 }
 0xaab   :  { %v2132_v36 = vpop.permute.xlu0 %2131  ;;  %v2126_v38 = vpop.permute.xlu1 %2125 }
 0xaac   :  { %2271 = vxpose.xlu0.b32.start [1/2] (short) (narrow) %v2150_v32, 8 }
 0xaaf   :  { %v2130_v39 = vpop.permute.xlu1 %2129 }
 0xab0   :  { %2272 = vxpose.xlu0.b32.end [2/2] (short) (narrow) %v2152_v34, 8 }
 0xab3   :  { %v2134_v40 = vpop.permute.xlu1 %2133 }
 0xad3   :  { %v2191_v37 = vpop.trf.xlu0 }
 0xad4   :  { %4121 = vmatprep.subr.mxu0 %v2191_v37 }
 0xad5   :  { %4122 = vmatpush3.msra.mxu0 %v2191_v37 }
 0xad6   :  { %4124 = vmatmul.mubr.msk.f32.vlgmr.msra.gmra.mxu0 %vm514_vm1, %v1960_v16 }
 0xad7   :  { %4133 = vmatprep.mubr.msk.f32.mxu0 %vm514_vm1, %v2128_v35 }
 0xb1c   :  { %v2223_v43 = vpop.trf.xlu1 }
 0xb1d   :  { %4126 = vmatprep.subr.mxu1 %v2223_v43 }
 0xb1e   :  { %4127 = vmatpush3.msra.mxu1 %v2223_v43 }
 0xb1f   :  { %4129 = vmatmul.mubr.msk.f32.vlgmr.msra.gmra.mxu1 %vm514_vm1, %v2126_v38 }
 0xb20   :  { %4138 = vmatprep.mubr.msk.f32.mxu1 %vm514_vm1, %v2132_v36  ;;  %v2255_v46 = vpop.trf.xlu0 }
 0xb21   :  { %4131 = vmatprep.subr.mxu0 %v2255_v46 }
 0xb22   :  { %4132 = vmatpush3.msra.mxu0 %v2255_v46 }
 0xb23   :  { %4134 = vmatmul.mubr.msk.f32.vlgmr.msra.gmra.mxu0 %vm514_vm1, %v2130_v39  ;;  %4141 = vmatprep.subr.mxu0 %v4781_v48 }
 0xb24   :  { %4142 = vmatpush3.msra.mxu0 %v4781_v48 }
 0xb25   :  { %4143 = vmatprep.subr.mxu0 %v4783_v50 }
 0xb26   :  { %4144 = vmatpush3.msra.mxu0 %v4783_v50 }
 0xb28   :  { %v2287_v41 = vpop.trf.xlu0 }
 0xb29   :  { %4136 = vmatprep.subr.mxu1 %v2287_v41 }
 0xb2a   :  { %4137 = vmatpush3.msra.mxu1 %v2287_v41 }
 0xb2b   :  { %4139 = vmatmul.mubr.msk.f32.vlgmr.msra.gmra.mxu1 %vm514_vm1, %v2134_v40 }
 0xb96   :  { %v4125_v51 = vpop.f32.mrf.mxu0 }
 0xb97   :  { %v2379_v52 = vadd.f32 %v4125_v51, %v4501_v57 }
 0xb98   :  { %v2373_v53 = vpop.f32.mrf.mxu0 }
 0xb99   :  { %v2374_v54 = vadd.f32 %v2373_v53, %v4503_v59  ;;  %v2622_v55 = vsel %vm831_vm4, %v2379_v52, -inf }
 0xb9a   :  { %2623 = vmax.xlane.f32.xlu0 %v2622_v55 }
 0xb9b   :  { %v2619_v56 = vsel %vm831_vm4, %v2374_v54, -inf }
 0xb9c   :  { %2620 = vmax.xlane.f32.xlu1 %v2619_v56 }
 0xbdf   :  { %v4130_v58 = vpop.f32.mrf.mxu1 }
 0xbe0   :  { %v2458_v61 = vadd.f32 %v4130_v58, %v4501_v57 }
 0xbe1   :  { %v2452_v1 = vpop.f32.mrf.mxu1 }
 0xbe2   :  { %v2453_v3 = vadd.f32 %v2452_v1, %v4503_v59  ;;  %v2628_v4 = vsel %vm831_vm4, %v2458_v61, -inf }
 0xbe3   :  { %v4135_v6 = vpop.f32.mrf.mxu0  ;;  %2629 = vmax.xlane.f32.xlu1 %v2628_v4 }
 0xbe4   :  { %v2537_v7 = vadd.f32 %v4135_v6, %v4501_v57  ;;  %v2625_v12 = vsel %vm831_vm4, %v2453_v3, -inf }
 0xbe5   :  { %v2531_v8 = vpop.f32.mrf.mxu0 }
 0xbe6   :  { %v2532_v9 = vadd.f32 %v2531_v8, %v4503_v59  ;;  %v2634_v17 = vsel %vm831_vm4, %v2537_v7, -inf }
 0xbe7   :  { %2635 = vmax.xlane.f32.xlu0 %v2634_v17  ;;  %2626 = vmax.xlane.f32.xlu1 %v2625_v12 }
 0xbe8   :  { %v2631_v13 = vsel %vm831_vm4, %v2532_v9, -inf }
 0xbeb   :  { %v4140_v14 = vpop.f32.mrf.mxu1  ;;  %2632 = vmax.xlane.f32.xlu1 %v2631_v13 }
 0xbec   :  { %v2616_v18 = vadd.f32 %v4140_v14, %v4501_v57 }
 0xbed   :  { %v2610_v19 = vpop.f32.mrf.mxu1 }
 0xbee   :  { %v2611_v21 = vadd.f32 %v2610_v19, %v4503_v59  ;;  %v2640_v47 = vsel %vm831_vm4, %v2616_v18, -inf }
 0xbef   :  { %2641 = vmax.xlane.f32.xlu0 %v2640_v47 }
 0xbf0   :  { %v2637_v22 = vsel %vm831_vm4, %v2611_v21, -inf }
 0xbf1   :  { %2638 = vmax.xlane.f32.xlu1 %v2637_v22 }
 0xc02   :  { %2159 = vrot.lane.b32.xlu1 %v4781_v48, %s4346_s8 }
 0xc05   :  { %2157 = vrot.lane.b32.xlu0 %v4783_v50, %s4346_s8 }
 0xc06   :  { %2165 = vrot.lane.b32.xlu1 %v4781_v48, %s4345_s30 }
 0xc0a   :  { %2163 = vrot.lane.b32.xlu1 %v4783_v50, %s4345_s30 }
 0xc23   :  { %v2624_v57 = vpop.xlane.xlu0 %2623 }
 0xc24   :  { %v2644_v59 = vsub.f32 %v2379_v52, %v2624_v57  ;;  %v3740_v57 = vld [vmem:[%s4981_s2 + $0x20] sm:$0xff] }
 0xc25   :  { %v2621_v23 = vpop.xlane.xlu1 %2620 }
 0xc26   :  { %v2653_v24 = vmul.f32 1.442695, %v2644_v59  ;;  %v2643_v25 = vsub.f32 %v2374_v54, %v2621_v23 }
 0xc28   :  { %4283 = vpow2.f32 %v2653_v24  ;;  %v2651_v27 = vmul.f32 1.442695, %v2643_v25 }
 0xc2a   :  { %4285 = vpow2.f32 %v2651_v27 }
 0xc35   :  { %v4815_v28 = vpop.eup %4283 }
 0xc36   :  { %v2670_v29 = vsel %vm831_vm4, %v4815_v28, 0.0 }
 0xc37   :  { %v4819_v30 = vpop.eup %4285  ;;  %2671 = vadd.xlane.f32.xlu0 %v2670_v29 }
 0xc38   :  { %v2667_v16 = vsel %vm831_vm4, %v4819_v30, 0.0 }
 0xc39   :  { %2668 = vadd.xlane.f32.xlu1 %v2667_v16 }
 0xc6c   :  { %v2630_v20 = vpop.xlane.xlu1 %2629 }
 0xc6d   :  { %v2646_v31 = vsub.f32 %v2458_v61, %v2630_v20 }
 0xc6f   :  { %v2657_v32 = vmul.f32 1.442695, %v2646_v31 }
 0xc70   :  { %v2636_v33 = vpop.xlane.xlu0 %2635  ;;  %v2627_v5 = vpop.xlane.xlu1 %2626 }
 0xc71   :  { %4287 = vpow2.f32 %v2657_v32  ;;  %v2648_v2 = vsub.f32 %v2537_v7, %v2636_v33  ;;  %v2645_v34 = vsub.f32 %v2453_v3, %v2627_v5 }
 0xc73   :  { %v2661_v35 = vmul.f32 1.442695, %v2648_v2  ;;  %v2655_v36 = vmul.f32 1.442695, %v2645_v34  ;;  %v3741_v34 = vld [vmem:[%s4981_s2 + $0x28] sm:$0xff] }
 0xc74   :  { %v2633_v37 = vpop.xlane.xlu1 %2632 }
 0xc75   :  { %4289 = vpow2.f32 %v2661_v35  ;;  %v2647_v38 = vsub.f32 %v2532_v9, %v2633_v37  ;;  %v3742_v35 = vld [vmem:[%s4981_s2 + $0x30] sm:$0xff] }
 0xc76   :  { %4291 = vpow2.f32 %v2655_v36  ;;  %v3743_v36 = vld [vmem:[%s4981_s2 + $0x38] sm:$0xff] }
 0xc77   :  { %v2659_v39 = vmul.f32 1.442695, %v2647_v38 }
 0xc78   :  { %v2642_v40 = vpop.xlane.xlu0 %2641 }
 0xc79   :  { %4293 = vpow2.f32 %v2659_v39  ;;  %v2650_v42 = vsub.f32 %v2616_v18, %v2642_v40 }
 0xc7a   :  { %v2639_v43 = vpop.xlane.xlu1 %2638 }
 0xc7b   :  { %v2665_v44 = vmul.f32 1.442695, %v2650_v42  ;;  %v2649_v45 = vsub.f32 %v2611_v21, %v2639_v43 }
 0xc7c   :  { %v2158_v53 = vpop.permute.xlu0 %2157 }
 0xc7d   :  { %4295 = vpow2.f32 %v2665_v44  ;;  %v2663_v46 = vmul.f32 1.442695, %v2649_v45 }
 0xc7e   :  { %v4288_v41 = vpop.eup %4287  ;;  %v2160_v51 = vpop.permute.xlu1 %2159 }
 0xc7f   :  { %4297 = vpow2.f32 %v2663_v46  ;;  %4148 = vmatprep.subr.mxu1 %v2160_v51  ;;  %v2676_v52 = vsel %vm831_vm4, %v4288_v41, 0.0 }
 0xc80   :  { %2677 = vadd.xlane.f32.xlu0 %v2676_v52  ;;  %4149 = vmatpush3.msra.mxu1 %v2160_v51 }
 0xc81   :  { %4150 = vmatprep.subr.mxu1 %v2158_v53 }
 0xc82   :  { %v4290_v54 = vpop.eup %4289  ;;  %4151 = vmatpush3.msra.mxu1 %v2158_v53  ;;  %v2166_v55 = vpop.permute.xlu1 %2165 }
 0xc83   :  { %v4292_v56 = vpop.eup %4291  ;;  %4155 = vmatprep.subr.mxu0 %v2166_v55  ;;  %v2682_v58 = vsel %vm831_vm4, %v4290_v54, 0.0 }
 0xc84   :  { %2683 = vadd.xlane.f32.xlu0 %v2682_v58  ;;  %v2673_v61 = vsel %vm831_vm4, %v4292_v56, 0.0 }
 0xc85   :  { %2674 = vadd.xlane.f32.xlu1 %v2673_v61 }
 0xc86   :  { %v4294_v1 = vpop.eup %4293  ;;  %v2164_v9 = vpop.permute.xlu1 %2163 }
 0xc87   :  { %v2679_v3 = vsel %vm831_vm4, %v4294_v1, 0.0 }
 0xc89   :  { %2680 = vadd.xlane.f32.xlu1 %v2679_v3 }
 0xc8a   :  { %v4296_v4 = vpop.eup %4295 }
 0xc8b   :  { %v2688_v6 = vsel %vm831_vm4, %v4296_v4, 0.0 }
 0xc8c   :  { %v4298_v7 = vpop.eup %4297  ;;  %2689 = vadd.xlane.f32.xlu0 %v2688_v6 }
 0xc8d   :  { %v2685_v8 = vsel %vm831_vm4, %v4298_v7, 0.0 }
 0xc8e   :  { %2686 = vadd.xlane.f32.xlu1 %v2685_v8 }
 0xc9f   :  { %2169 = vrot.lane.b32.xlu1 %v4783_v50, %s4347_s9 }
 0xca2   :  { %2171 = vrot.lane.b32.xlu0 %v4781_v48, %s4347_s9 }
 0xcc0   :  { %v2672_v17 = vpop.xlane.xlu0 %2671 }
 0xcc1   :  { %4299 = vrcp.f32 %v2672_v17 }
 0xcc2   :  { %v2669_v12 = vpop.xlane.xlu1 %2668 }
 0xcc3   :  { %4301 = vrcp.f32 %v2669_v12 }
 0xcce   :  { %v4300_v13 = vpop.eup %4299 }
 0xccf   :  { %v2694_v19 = vmul.f32 %v4300_v13, %v4815_v28 }
 0xcd0   :  { %v4302_v14 = vpop.eup %4301 }
 0xcd1   :  { %v2692_v18 = vmul.f32 %v4302_v14, %v4819_v30 }
 0xcd3   :  { %4145 = vmatprep.mubr.msk.f32.mxu0 %vm831_vm4, %v2692_v18 }
 0xcd4   :  { %4146 = vmatmul.mubr.msk.f32.vlgmr.msra.gmra.mxu0 %vm831_vm4, %v2694_v19 }
 0xcd5   :  { %4156 = vmatpush3.msra.mxu0 %v2166_v55 }
 0xcd6   :  { %4157 = vmatprep.subr.mxu0 %v2164_v9 }
 0xcd7   :  { %4158 = vmatpush3.msra.mxu0 %v2164_v9  ;;  %v3377_v9 = vrot.slane %v4752_v49, %v1588_v62 }
 0xcd8   :  { %4169 = vmatprep.subr.mxu0 %v3740_v57 }
 0xd09   :  { %v2678_v50 = vpop.xlane.xlu0 %2677 }
 0xd0a   :  { %4303 = vrcp.f32 %v2678_v50 }
 0xd0d   :  { %v2684_v21 = vpop.xlane.xlu0 %2683 }
 0xd0e   :  { %v2675_v48 = vpop.xlane.xlu1 %2674 }
 0xd0f   :  { %4305 = vrcp.f32 %v2675_v48 }
 0xd10   :  { %4307 = vrcp.f32 %v2684_v21 }
 0xd12   :  { %v2681_v47 = vpop.xlane.xlu1 %2680 }
 0xd13   :  { %4309 = vrcp.f32 %v2681_v47 }
 0xd15   :  { %v2690_v22 = vpop.xlane.xlu0 %2689 }
 0xd16   :  { %4311 = vrcp.f32 %v2690_v22 }
 0xd17   :  { %v2687_v59 = vpop.xlane.xlu1 %2686  ;;  %v4304_v24 = vpop.eup %4303 }
 0xd18   :  { %4313 = vrcp.f32 %v2687_v59  ;;  %v2698_v28 = vmul.f32 %v4304_v24, %v4288_v41 }
 0xd19   :  { %v2172_v23 = vpop.permute.xlu0 %2171 }
 0xd1a   :  { %4162 = vmatprep.subr.mxu1 %v2172_v23 }
 0xd1b   :  { %v2170_v16 = vpop.permute.xlu1 %2169 }
 0xd1c   :  { %v4306_v25 = vpop.eup %4305 }
 0xd1d   :  { %v2696_v27 = vmul.f32 %v4306_v25, %v4292_v56  ;;  %v4308_v29 = vpop.eup %4307 }
 0xd1e   :  { %v2702_v31 = vmul.f32 %v4308_v29, %v4290_v54 }
 0xd1f   :  { %4152 = vmatprep.mubr.msk.f32.mxu1 %vm831_vm4, %v2696_v27 }
 0xd20   :  { %v4310_v30 = vpop.eup %4309  ;;  %4153 = vmatmul.mubr.msk.f32.vlgmr.msra.gmra.mxu1 %vm831_vm4, %v2698_v28 }
 0xd21   :  { %4163 = vmatpush3.msra.mxu1 %v2172_v23  ;;  %v2700_v20 = vmul.f32 %v4310_v30, %v4294_v1  ;;  %v3755_v30 = vld [vmem:[%s4982_s3 + $0x38] sm:$0xff] }
 0xd22   :  { %4164 = vmatprep.subr.mxu1 %v2170_v16 }
 0xd23   :  { %4165 = vmatpush3.msra.mxu1 %v2170_v16  ;;  %4159 = vmatprep.mubr.msk.f32.mxu0 %vm831_vm4, %v2700_v20  ;;  %v4312_v32 = vpop.eup %4311  ;;  %v3754_v16 = vld [vmem:[%s4982_s3 + $0x30] sm:$0xff]  ;;  %v3753_v20 = vld [vmem:[%s4982_s3 + $0x28] sm:$0xff] }
 0xd24   :  { %4160 = vmatmul.mubr.msk.f32.vlgmr.msra.gmra.mxu0 %vm831_vm4, %v2702_v31  ;;  %v2706_v2 = vmul.f32 %v4312_v32, %v4296_v4  ;;  %4174 = vmatprep.subr.mxu1 %v3741_v34  ;;  %v3752_v31 = vld [vmem:[%s4982_s3 + $0x20] sm:$0xff]  ;;  %v3775_v32 = vld [vmem:[%s4983_s4 + $0xf8] sm:$0xff]  ;;  %s4349_s3 = smov [#allocation2]  }
 0xd25   :  { %v4314_v33 = vpop.eup %4313  ;;  %4170 = vmatpush3.msra.mxu0 %v3740_v57  ;;  %s3659_s21 = sshll.u32 %s4349_s3, 4  ;;  %s3660_s21 = int_to_ptr.vmem [resolvable:$true] %s3659_s21 }
 0xd26   :  { %v2704_v5 = vmul.f32 %v4314_v33, %v4298_v7  ;;  %4179 = vmatprep.subr.mxu0 %v3742_v35  ;;  %v3774_v33 = vld [vmem:[%s4983_s4 + $0xf0] sm:$0xff]  ;;  %s4323_s22 = scalar_lea.vmem %s3660_s21, 256  ;;  %p4328_p1 = scmp.lt.s32.totalorder %s3660_s21, %s3660_s21 }
 0xd27   :  { %p4324_p0 = scmp.ne.s32.totalorder %s3660_s21, %s4323_s22  ;;  %p4329_p2 = scmp.lt.s32.totalorder %s4323_s22, %s4323_s22 }
 0xd28   :  { %4166 = vmatprep.mubr.msk.f32.mxu1 %vm831_vm4, %v2704_v5  ;;  %v3773_v5 = vld [vmem:[%s4983_s4 + $0xe8] sm:$0xff] }
 0xd29   :  { %4167 = vmatmul.mubr.msk.f32.vlgmr.msra.gmra.mxu1 %vm831_vm4, %v2706_v2  ;;  %v3772_v2 = vld [vmem:[%s4983_s4 + $0xe0] sm:$0xff]  ;;  %p4330_p3 = por %p4329_p2, %p4328_p1 }
 0xd2a   :  { %4175 = vmatpush3.msra.mxu1 %v3741_v34  ;;  %v3771_v34 = vld [vmem:[%s4983_s4 + $0xd8] sm:$0xff] }
 0xd2b   :  { %4184 = vmatprep.subr.mxu1 %v3743_v36  ;;  %p4331_p4 = pnand %p4330_p3, %p4324_p0 }
 0xd94   :  { %v4147_v37 = vpop.f32.mrf.mxu0 }
 0xd96   :  { %v2779_v38 = vpop.f32.mrf.mxu0 }
 0xd97   :  { %4171 = vmatprep.mubr.msk.f32.mxu0 %vm514_vm1, %v2779_v38  ;;  %v3767_v38 = vld [vmem:[%s4983_s4 + $0xb8] sm:$0xff] }
 0xd98   :  { %4172 = vmatmul.mubr.msk.f32.vlgmr.msra.gmra.mxu0 %vm514_vm1, %v4147_v37  ;;  %v3768_v37 = vld [vmem:[%s4983_s4 + $0xc0] sm:$0xff] }
 0xd99   :  { %4180 = vmatpush3.msra.mxu0 %v3742_v35  ;;  %v3770_v35 = vld [vmem:[%s4983_s4 + $0xd0] sm:$0xff] }
 0xd9a   :  { %4189 = vmatprep.subr.mxu0 %v3755_v30 }
 0xde0   :  { %v4154_v39 = vpop.f32.mrf.mxu1 }
 0xde2   :  { %v2860_v40 = vpop.f32.mrf.mxu1 }
 0xde3   :  { %4176 = vmatprep.mubr.msk.f32.mxu1 %vm514_vm1, %v2860_v40  ;;  %v3765_v40 = vld [vmem:[%s4983_s4 + $0xa8] sm:$0xff] }
 0xde4   :  { %v4161_v42 = vpop.f32.mrf.mxu0  ;;  %4177 = vmatmul.mubr.msk.f32.vlgmr.msra.gmra.mxu1 %vm514_vm1, %v4154_v39  ;;  %v3766_v39 = vld [vmem:[%s4983_s4 + $0xb0] sm:$0xff] }
 0xde5   :  { %4185 = vmatpush3.msra.mxu1 %v3743_v36  ;;  %v3769_v36 = vld [vmem:[%s4983_s4 + $0xc8] sm:$0xff] }
 0xde6   :  { %v2941_v43 = vpop.f32.mrf.mxu0  ;;  %4200 = vmatprep.subr.mxu1 %v3775_v32 }
 0xde7   :  { %4181 = vmatprep.mubr.msk.f32.mxu0 %vm514_vm1, %v2941_v43 }
 0xde8   :  { %4182 = vmatmul.mubr.msk.f32.vlgmr.msra.gmra.mxu0 %vm514_vm1, %v4161_v42  ;;  %v3764_v42 = vld [vmem:[%s4983_s4 + $0xa0] sm:$0xff] }
 0xde9   :  { %v4168_v44 = vpop.f32.mrf.mxu1  ;;  %4190 = vmatpush3.msra.mxu0 %v3755_v30 }
 0xdea   :  { %4191 = vmatprep.subr.mxu0 %v3754_v16 }
 0xdeb   :  { %v3022_v45 = vpop.f32.mrf.mxu1  ;;  %4192 = vmatpush3.msra.mxu0 %v3754_v16 }
 0xdec   :  { %4186 = vmatprep.mubr.msk.f32.mxu1 %vm514_vm1, %v3022_v45  ;;  %4193 = vmatprep.subr.mxu0 %v3753_v20 }
 0xded   :  { %4187 = vmatmul.mubr.msk.f32.vlgmr.msra.gmra.mxu1 %vm514_vm1, %v4168_v44  ;;  %4194 = vmatpush3.msra.mxu0 %v3753_v20 }
 0xdee   :  { %4195 = vmatprep.subr.mxu0 %v3752_v31  ;;  %4201 = vmatpush3.msra.mxu1 %v3775_v32 }
 0xdef   :  { %4196 = vmatpush3.msra.mxu0 %v3752_v31  ;;  %4202 = vmatprep.subr.mxu1 %v3774_v33 }
 0xdf0   :  { %4203 = vmatpush3.msra.mxu1 %v3774_v33 }
 0xdf1   :  { %4204 = vmatprep.subr.mxu1 %v3773_v5 }
 0xdf2   :  { %4205 = vmatpush3.msra.mxu1 %v3773_v5 }
 0xdf3   :  { %4206 = vmatprep.subr.mxu1 %v3772_v2 }
 0xdf4   :  { %4207 = vmatpush3.msra.mxu1 %v3772_v2  ;;  %v3643_v2 = vrot.slane %v4752_v49, %v1852_v60 }
 0xdf5   :  { %4208 = vmatprep.subr.mxu1 %v3771_v34 }
 0xdf6   :  { %4209 = vmatpush3.msra.mxu1 %v3771_v34 }
 0xdf7   :  { %4210 = vmatprep.subr.mxu1 %v3770_v35 }
 0xdf8   :  { %4211 = vmatpush3.msra.mxu1 %v3770_v35 }
 0xdf9   :  { %4212 = vmatprep.subr.mxu1 %v3769_v36 }
 0xdfa   :  { %4213 = vmatpush3.msra.mxu1 %v3769_v36 }
 0xdfb   :  { %4214 = vmatprep.subr.mxu1 %v3768_v37 }
 0xdfc   :  { %4215 = vmatpush3.msra.mxu1 %v3768_v37  ;;  %v3776_v37 = vld [vmem:[%s4985_s6 + $0x18] ss:$0 sm:$0xff] }
 0xdfd   :  { %4216 = vmatprep.subr.mxu1 %v3767_v38 }
 0xdfe   :  { %4217 = vmatpush3.msra.mxu1 %v3767_v38 }
 0xdff   :  { %4218 = vmatprep.subr.mxu1 %v3766_v39 }
 0xe00   :  { %4219 = vmatpush3.msra.mxu1 %v3766_v39 }
 0xe01   :  { %4220 = vmatprep.subr.mxu1 %v3765_v40 }
 0xe02   :  { %4221 = vmatpush3.msra.mxu1 %v3765_v40 }
 0xe03   :  { %4222 = vmatprep.subr.mxu1 %v3764_v42 }
 0xe04   :  { %4223 = vmatpush3.msra.mxu1 %v3764_v42 }
 0xe58   :  { %v4173_v46 = vpop.f32.mrf.mxu0 }
 0xe59   :  { %v3367_v55 = vsel %vm92_vm0, %v4173_v46, 0.0 }
 0xe5a   :  { %v3108_v51 = vpop.f32.mrf.mxu0 }
 0xe5b   :  { %v3360_v3 = vsel %vm92_vm0, %v3108_v51, 0.0 }
 0xea4   :  { %v4178_v41 = vpop.f32.mrf.mxu1 }
 0xea5   :  { %v3368_v53 = vsel %vm92_vm0, %v4178_v41, 0.0 }
 0xea6   :  { %v3189_v52 = vpop.f32.mrf.mxu1  ;;  %v3369_v1 = vadd.f32 %v3368_v53, %v3367_v55  ;;  %v3417_v55 = vrot.slane %v4752_v49, %v1629_v0  ;;  %v3762_v0 = vld [vmem:[%s4983_s4 + $0x90] sm:$0xff] }
 0xea7   :  { %v3361_v56 = vsel %vm92_vm0, %v3189_v52, 0.0  ;;  %v3411_v52 = vrot.slane %v4752_v49, %v1623_v63  ;;  %v3763_v63 = vld [vmem:[%s4983_s4 + $0x98] sm:$0xff] }
 0xea8   :  { %v4183_v54 = vpop.f32.mrf.mxu0  ;;  %v3362_v6 = vadd.f32 %v3361_v56, %v3360_v3  ;;  %4224 = vmatprep.subr.mxu1 %v3763_v63 }
 0xea9   :  { %v3370_v58 = vsel %vm92_vm0, %v4183_v54, 0.0  ;;  %4225 = vmatpush3.msra.mxu1 %v3763_v63 }
 0xeaa   :  { %v3270_v61 = vpop.f32.mrf.mxu0  ;;  %v3371_v7 = vadd.f32 %v3370_v58, %v3369_v1  ;;  %4226 = vmatprep.subr.mxu1 %v3762_v0 }
 0xeab   :  { %v3363_v4 = vsel %vm92_vm0, %v3270_v61, 0.0  ;;  %4227 = vmatpush3.msra.mxu1 %v3762_v0 }
 0xeac   :  { %v3364_v12 = vadd.f32 %v3363_v4, %v3362_v6  ;;  %v3761_v6 = vld [vmem:[%s4983_s4 + $0x88] sm:$0xff] }
 0xead   :  { %v4188_v8 = vpop.f32.mrf.mxu1  ;;  %4228 = vmatprep.subr.mxu1 %v3761_v6 }
 0xeae   :  { %v3372_v17 = vsel %vm92_vm0, %v4188_v8, 0.0  ;;  %4229 = vmatpush3.msra.mxu1 %v3761_v6  ;;  %v3757_v8 = vld [vmem:[%s4984_s5 + $0x1] ss:$0 sm:$0xff] }
 0xeaf   :  { %v3373_v13 = vadd.f32 %v3372_v17, %v3371_v7  ;;  %v3351_v14 = vpop.f32.mrf.mxu1  ;;  %v3760_v7 = vld [vmem:[%s4983_s4 + $0x80] sm:$0xff] }
 0xeb0   :  { %v3365_v18 = vsel %vm92_vm0, %v3351_v14, 0.0  ;;  %4230 = vmatprep.subr.mxu1 %v3760_v7 }
 0xeb1   :  { %v3379_v19 = vadd.f32 %v3377_v9, %v3373_v13  ;;  %v3366_v50 = vadd.f32 %v3365_v18, %v3364_v12  ;;  %4231 = vmatpush3.msra.mxu1 %v3760_v7 }
 0xeb3   :  { %v3378_v48 = vadd.f32 %v3377_v9, %v3366_v50  ;;  %v3381_v21 = vadd.f32 %v3379_v19, %v4714_v11  ;;  %v3536_v19 = vrot.slane %v4752_v49, %v1745_v26 }
 0xeb5   :  { %v3385_v47 = vsel %vm92_vm0, %v3381_v21, 0.0  ;;  %v3380_v22 = vadd.f32 %v3378_v48, %v4712_v10 }
 0xeb6   :  { %3386 = vadd.xlane.f32.xlu1 %v3385_v47 }
 0xeb7   :  { %v3382_v57 = vsel %vm92_vm0, %v3380_v22, 0.0 }
 0xeb8   :  { %3383 = vadd.xlane.f32.xlu0 %v3382_v57 }
 0xf3f   :  { %v3387_v62 = vpop.xlane.xlu1 %3386 }
 0xf40   :  { %v3389_v59 = vmul.f32 0.03125, %v3387_v62 }
 0xf41   :  { %v3384_v23 = vpop.xlane.xlu0 %3383 }
 0xf42   :  { %v3388_v24 = vmul.f32 0.03125, %v3384_v23  ;;  %v4878_v25 = vsub.f32 %v3381_v21, %v3389_v59 }
 0xf44   :  { %v4880_v27 = vsub.f32 %v3380_v22, %v3388_v24  ;;  %v3393_v10 = vmul.f32 %v4878_v25, %v4878_v25 }
 0xf46   :  { %v3392_v28 = vmul.f32 %v4880_v27, %v4880_v27  ;;  %v3397_v29 = vsel %vm92_vm0, %v3393_v10, 0.0 }
 0xf48   :  { %v3394_v11 = vsel %vm92_vm0, %v3392_v28, 0.0 }
 0xf49   :  { %3395 = vadd.xlane.f32.xlu0 %v3394_v11 }
 0xf4d   :  { %3398 = vadd.xlane.f32.xlu0 %v3397_v29 }
 0xfd2   :  { %v3396_v43 = vpop.xlane.xlu0 %3395 }
 0xfd3   :  { %v3400_v44 = vmul.f32 0.03125, %v3396_v43 }
 0xfd5   :  { %v3402_v45 = vadd.f32 1e-05, %v3400_v44 }
 0xfd6   :  { %v3399_v46 = vpop.xlane.xlu0 %3398 }
 0xfd7   :  { %4315 = vrsqrt.f32 %v3402_v45  ;;  %v3401_v41 = vmul.f32 0.03125, %v3399_v46 }
 0xfd9   :  { %v3403_v51 = vadd.f32 1e-05, %v3401_v41 }
 0xfdb   :  { %4317 = vrsqrt.f32 %v3403_v51 }
 0xfe4   :  { %v4316_v53 = vpop.eup %4315 }
 0xfe5   :  { %v3406_v54 = vmul.f32 %v4316_v53, %v4880_v27 }
 0xfe7   :  { %v3412_v56 = vmul.f32 %v3411_v52, %v3406_v54 }
 0xfe8   :  { %v4318_v58 = vpop.eup %4317 }
 0xfe9   :  { %v3407_v61 = vmul.f32 %v4318_v58, %v4878_v25  ;;  %v3418_v1 = vadd.f32 %v3417_v55, %v3412_v56 }
 0xfeb   :  { %v3413_v3 = vmul.f32 %v3411_v52, %v3407_v61  ;;  %4197 = vmatprep.mubr.msk.f32.mxu0 %vm92_vm0, %v3418_v1 }
 0xfed   :  { %v3419_v4 = vadd.f32 %v3417_v55, %v3413_v3 }
 0xfef   :  { %4198 = vmatmul.mubr.msk.f32.vlgmr.msra.gmra.mxu0 %vm92_vm0, %v3419_v4 }
0x10af   :  { %v4199_v9 = vpop.f32.mrf.mxu0 }
0x10b0   :  { %v3511_v17 = vadd.f32 %v4199_v9, %v3757_v8 }
0x10b1   :  { %v3505_v12 = vpop.f32.mrf.mxu0 }
0x10b2   :  { %v3506_v13 = vadd.f32 %v3757_v8, %v3505_v12  ;;  %v3515_v18 = vmax.f32 %v3511_v17, 0.0 }
0x10b4   :  { %v3514_v14 = vmax.f32 %v3506_v13, 0.0 }
0x10b6   :  { %4232 = vmatprep.mubr.f32.mxu1 %v3514_v14 }
0x10b7   :  { %4233 = vmatmul.mubr.f32.vlgmr.msra.gmra.mxu1 %v3515_v18 }
0x1177   :  { %v4234_v50 = vpop.f32.mrf.mxu1 }
0x1178   :  { %v3609_v48 = vadd.f32 %v4234_v50, %v3536_v19 }
0x1179   :  { %v3603_v21 = vpop.f32.mrf.mxu1 }
0x117a   :  { %v3604_v47 = vadd.f32 %v3603_v21, %v3536_v19  ;;  %v3613_v22 = vadd.f32 %v3609_v48, %v3419_v4 }
0x117c   :  { %v3617_v57 = vsel %vm92_vm0, %v3613_v22, 0.0  ;;  %v3612_v62 = vadd.f32 %v3604_v47, %v3418_v1 }
0x117d   :  { %3618 = vadd.xlane.f32.xlu0 %v3617_v57 }
0x117e   :  { %v3614_v59 = vsel %vm92_vm0, %v3612_v62, 0.0 }
0x117f   :  { %3615 = vadd.xlane.f32.xlu1 %v3614_v59 }
0x1206   :  { %v3619_v23 = vpop.xlane.xlu0 %3618 }
0x1207   :  { %v3621_v24 = vmul.f32 0.03125, %v3619_v23 }
0x1208   :  { %v3616_v25 = vpop.xlane.xlu1 %3615 }
0x1209   :  { %v3623_v27 = vsub.f32 %v3613_v22, %v3621_v24  ;;  %v3620_v28 = vmul.f32 0.03125, %v3616_v25 }
0x120b   :  { %v3622_v11 = vsub.f32 %v3612_v62, %v3620_v28  ;;  %v3625_v10 = vmul.f32 %v3623_v27, %v3623_v27 }
0x120d   :  { %v3629_v26 = vsel %vm92_vm0, %v3625_v10, 0.0  ;;  %v3624_v29 = vmul.f32 %v3622_v11, %v3622_v11 }
0x120e   :  { %3630 = vadd.xlane.f32.xlu0 %v3629_v26 }
0x120f   :  { %v3626_v30 = vsel %vm92_vm0, %v3624_v29, 0.0 }
0x1210   :  { %3627 = vadd.xlane.f32.xlu1 %v3626_v30 }
0x1297   :  { %v3631_v16 = vpop.xlane.xlu0 %3630 }
0x1298   :  { %v3633_v20 = vmul.f32 0.03125, %v3631_v16 }
0x1299   :  { %v3628_v31 = vpop.xlane.xlu1 %3627 }
0x129a   :  { %v3635_v32 = vadd.f32 1e-05, %v3633_v20  ;;  %v3632_v33 = vmul.f32 0.03125, %v3628_v31 }
0x129c   :  { %4319 = vrsqrt.f32 %v3635_v32  ;;  %v3634_v5 = vadd.f32 1e-05, %v3632_v33 }
0x129e   :  { %4321 = vrsqrt.f32 %v3634_v5 }
0x12a9   :  { %v4320_v34 = vpop.eup %4319 }
0x12aa   :  { %v3639_v35 = vmul.f32 %v4320_v34, %v3623_v27 }
0x12ab   :  { %v4322_v36 = vpop.eup %4321 }
0x12ac   :  { %v3638_v38 = vmul.f32 %v4322_v36, %v3622_v11  ;;  %v3645_v39 = vmul.f32 %v3643_v2, %v3639_v35 }
0x12ae   :  { %v3644_v40 = vmul.f32 %v3643_v2, %v3638_v38  ;;  %v3651_v42 = vadd.f32 %v3776_v37, %v3645_v39 }
0x12b0   :  { %v3650_v43 = vadd.f32 %v3776_v37, %v3644_v40  ;;  %3653 = vst.msk [vmem:[#allocation2 + $0x8] sm:$0xff] %vm92_vm0, %v3651_v42 }
0x12b2   :  { %3652 = vst.msk [vmem:[#allocation2] sm:$0xff] %vm92_vm0, %v3650_v43 }
0x12b3   :  { %4334 = shalt.err (!%p4331_p4)
}
0x12b4   :  { %s4350_s6 = smov 128   ;;  %s4351_s23 = smov 8  }
0x12b5   :  { %3665 = dma.vmem_to_hbm [thread:$0]  %s3660_s21, 256, %s4986_s7, [#allocation3], %s4350_s6, %s4350_s6, %s4351_s23  }
0x12b6   :  { %4343 = dma.done.wait [#allocation3], 256  }
0x12b7   :  { %4344 = vsyncadd [#allocation3], 4294967040 }
0x12b8   :  { %3669 = vsyncpa [#allocation3], 1 }

</bundles_post_ra>
